<compile_context>
chip_gen: v7x
topology: tpu7x:2x2x1
jax: 0.10.0
libtpu: 0.0.40
codegen_flags: <defaults>
</compile_context>

<pallas_src>
import math
import functools

import jax
import jax.numpy as jnp
from jax import lax
from jax.experimental import pallas as pl
from jax.experimental.pallas import tpu as pltpu


# ----------------------------------------------------------------------------
# Helpers
# ----------------------------------------------------------------------------
def _vmem_capacity_bytes() -> int:
    try:
        return int(pltpu.get_tpu_info().vmem_capacity_bytes)
    except Exception:
        return 128 * 1024 * 1024


def _pick_tile(total: int, cap: int, align: int) -> int:
    """Largest tile <= cap that divides `total` and is `align`-aligned.
    Falls back to `total` (full extent, no tiling) if none exists."""
    if total <= cap:
        return total
    t = (cap // align) * align
    while t >= align:
        if total % t == 0:
            return t
        t -= align
    return total


# ----------------------------------------------------------------------------
# Kernel 1: input RMSNorm + swiftkv attention (flash-decode) + residual
#   grid = (num_kv_heads, S_tiles)        both axes "arbitrary" (accumulation)
# ----------------------------------------------------------------------------
def _swiftkv_attn_kernel(
    hs_ref,      # (B, H)          f32   resident
    cos_ref,     # (B, D)          f32   resident
    sins_ref,    # (B, D)          f32   sign-folded sin, resident
    mask_ref,    # (B, TS)         f32   1.0 where key position is masked out
    kT_ref,      # (B, 1, D, TS)   bf16  K^T tile of current kv head
    v_ref,       # (B, 1, TS, D)   bf16  V tile of current kv head
    wq_ref,      # (1, H, G*D)     bf16  q-proj slab of current kv head
    wo_ref,      # (G*D, H)        bf16  o-proj slab of current kv head
    ln1_ref,     # (1, H)          f32
    h1_ref,      # (B, H)          f32   output: residual + attention
    xn_sc,       # (B, H)          bf16  scratch: RMSNorm(x)
    q_sc,        # (B, G, D)       bf16  scratch: rotated, scaled q of current kv head
    m_sc,        # (B, G, 1)       f32
    l_sc,        # (B, G, 1)       f32
    acc_sc,      # (B, G, D)       f32
    *,
    num_heads: int,
    num_kv_heads: int,
    head_dim: int,
    eps: float,
):
    kv = pl.program_id(0)
    s = pl.program_id(1)
    n_s = pl.num_programs(1)

    G = num_heads // num_kv_heads
    D = head_dim
    half = D // 2
    scale = 1.0 / math.sqrt(D)
    B = hs_ref.shape[0]
    cdt = wq_ref.dtype            # matmul-operand dtype (bf16)

    # ---- once per call: input RMSNorm + residual seed -----------------------
    @pl.when(jnp.logical_and(kv == 0, s == 0))
    def _():
        x = hs_ref[...]
        var = jnp.mean(x * x, axis=-1, keepdims=True)
        xn_sc[...] = (x * lax.rsqrt(var + eps) * ln1_ref[...]).astype(cdt)
        h1_ref[...] = x           # residual; attention contributions += below

    # ---- once per kv head: q projection + RoPE, reset flash state -----------
    @pl.when(s == 0)
    def _():
        q = jnp.dot(xn_sc[...], wq_ref[0],
                    preferred_element_type=jnp.float32)       # (B, G*D)
        q3 = q.reshape(B, G, D)
        cos = cos_ref[...][:, None, :]                        # (B, 1, D)
        sins = sins_ref[...][:, None, :]                      # sign-folded sin
        if D >= 128:
            rot = pltpu.roll(q3, half, axis=-1)               # XLU, free-ish
        else:
            # toy head_dim fallback (lane dim too small for a useful roll)
            rot = jnp.concatenate([q3[..., half:], q3[..., :half]], axis=-1)
        q_sc[...] = ((q3 * cos + rot * sins) * scale).astype(cdt)
        m_sc[...] = jnp.full(m_sc.shape, -jnp.inf, dtype=m_sc.dtype)
        l_sc[...] = jnp.zeros(l_sc.shape, dtype=l_sc.dtype)
        acc_sc[...] = jnp.zeros(acc_sc.shape, dtype=acc_sc.dtype)

    # ---- flash-decode update for this S tile --------------------------------
    qh = q_sc[...]                                            # (B, G, D)
    kt = kT_ref[:, 0]                                         # (B, D, TS)
    vt = v_ref[:, 0]                                          # (B, TS, D)
    sc = lax.dot_general(qh, kt, (((2,), (1,)), ((0,), (0,))),
                         preferred_element_type=jnp.float32)  # (B, G, TS)
    # match the reference/HF convention exactly: replace masked scores with -1e4
    sc = jnp.where(mask_ref[...][:, None, :] != 0.0, jnp.float32(-10000.0), sc)

    m_prev = m_sc[...]
    m_new = jnp.maximum(m_prev, jnp.max(sc, axis=-1, keepdims=True))
    alpha = jnp.exp(m_prev - m_new)
    p = jnp.exp(sc - m_new)
    l_sc[...] = alpha * l_sc[...] + jnp.sum(p, axis=-1, keepdims=True)
    acc_sc[...] = alpha * acc_sc[...] + lax.dot_general(
        p.astype(cdt), vt, (((2,), (1,)), ((0,), (0,))),
        preferred_element_type=jnp.float32)                   # (B, G, D)
    m_sc[...] = m_new

    # ---- finalize this kv head: normalize and fold into Wo slab -------------
    @pl.when(s == n_s - 1)
    def _():
        attn = acc_sc[...] / l_sc[...]                        # exact normalization
        h1_ref[...] += jnp.dot(attn.reshape(B, G * D).astype(cdt), wo_ref[...],
                               preferred_element_type=jnp.float32)


# ----------------------------------------------------------------------------
# Kernel 2: post-attention RMSNorm + Llama MLP + residual
#   grid = (I_tiles,)   "arbitrary" (accumulation over the intermediate dim)
# ----------------------------------------------------------------------------
def _swiftkv_mlp_kernel(
    h1_ref,      # (B, H)        f32   resident (residual + attention)
    wgu_ref,     # (2, H, TI)    bf16  fused [gate | up] slab of current I tile
    wd_ref,      # (TI, H)       bf16  down-proj slab of current I tile
    ln2_ref,     # (1, H)        f32
    out_ref,     # (B, H)        f32   output: h1 + MLP(h1)
    xn2_sc,      # (B, H)        bf16  scratch: RMSNorm(h1)
    *,
    eps: float,
):
    i = pl.program_id(0)
    cdt = wgu_ref.dtype

    @pl.when(i == 0)
    def _():
        h1 = h1_ref[...]
        var = jnp.mean(h1 * h1, axis=-1, keepdims=True)
        xn2_sc[...] = (h1 * lax.rsqrt(var + eps) * ln2_ref[...]).astype(cdt)
        out_ref[...] = h1                                      # residual seed

    xn2 = xn2_sc[...]
    g = jnp.dot(xn2, wgu_ref[0], preferred_element_type=jnp.float32)   # (B, TI)
    u = jnp.dot(xn2, wgu_ref[1], preferred_element_type=jnp.float32)   # (B, TI)
    act = (g * jax.nn.sigmoid(g)) * u                                   # SiLU(g)*u
    out_ref[...] += jnp.dot(act.astype(cdt), wd_ref[...],
                            preferred_element_type=jnp.float32)


# ----------------------------------------------------------------------------
# Wrapper
# ----------------------------------------------------------------------------
def swiftkv_decoder_layer(hs, cos_sel, sin_signed, mask_f, k_cache, v_cache,
                          params, *, num_heads, num_kv_heads, head_dim, eps):
    B, _, H = hs.shape
    KVH = num_kv_heads
    S = k_cache.shape[2]
    D = head_dim
    G = num_heads // num_kv_heads
    NHD = num_heads * D
    I = params["wg"].shape[1]
    wdtype = params["wq"].dtype

    # ---- generation-aware tile sizes / VMEM budget ---------------------------
    vmem_cap = _vmem_capacity_bytes()
    vmem_limit = min((vmem_cap * 3) // 4, 96 * 1024 * 1024)
    ts = _pick_tile(S, 512, 128)                       # kv-seq tile
    ti_cap = 1024 if vmem_cap <= 64 * 1024 * 1024 else 2048   # smaller on v7x
    ti = _pick_tile(I, ti_cap, 128)                    # intermediate tile

    hs2d = hs.reshape(B, H)
    # TODO(synk): in a real serving stack the K cache is stored pre-transposed;
    # here we transpose once in the wrapper (weight/cache prep, not per-step work).
    kT = jnp.swapaxes(k_cache, 2, 3)                   # (B, KVH, D, S)
    # per-kv-head q-proj slabs: (KVH, H, G*D) — done once at weight-load time.
    wq_r = params["wq"].reshape(H, KVH, G * D).transpose(1, 0, 2)
    # fused gate/up weight: (2, H, I) — one streamed tile per I step.
    w_gu = jnp.stack([params["wg"], params["wu"]], axis=0)

    # ---- attention (flash-decode) --------------------------------------------
    attn_kernel = functools.partial(
        _swiftkv_attn_kernel,
        num_heads=num_heads, num_kv_heads=num_kv_heads,
        head_dim=head_dim, eps=eps)

    attn_flops = 2 * B * H * NHD + 4 * B * num_heads * S * D + 2 * B * NHD * H
    attn_bytes = sum(int(a.size) * a.dtype.itemsize for a in
                     (hs2d, cos_sel, sin_signed, mask_f, kT, v_cache,
                      wq_r, params["wo"], params["ln1"])) + B * H * 4
    attn_trans = B * num_heads * S + B * num_heads + B

    h1 = pl.pallas_call(
        attn_kernel,
        out_shape=jax.ShapeDtypeStruct((B, H), jnp.float32),
        grid_spec=pltpu.PrefetchScalarGridSpec(
            num_scalar_prefetch=0,
            grid=(KVH, S // ts),
            in_specs=[
                pl.BlockSpec((B, H), lambda kv, s: (0, 0)),            # hs
                pl.BlockSpec((B, D), lambda kv, s: (0, 0)),            # cos
                pl.BlockSpec((B, D), lambda kv, s: (0, 0)),            # sin (signed)
                pl.BlockSpec((B, ts), lambda kv, s: (0, s)),           # mask tile
                pl.BlockSpec((B, 1, D, ts), lambda kv, s: (0, kv, 0, s)),  # K^T tile
                pl.BlockSpec((B, 1, ts, D), lambda kv, s: (0, kv, s, 0)),  # V tile
                pl.BlockSpec((1, H, G * D), lambda kv, s: (kv, 0, 0)),     # wq slab
                pl.BlockSpec((G * D, H), lambda kv, s: (kv, 0)),           # wo slab
                pl.BlockSpec((1, H), lambda kv, s: (0, 0)),                # ln1
            ],
            out_specs=pl.BlockSpec((B, H), lambda kv, s: (0, 0)),
            scratch_shapes=[
                pltpu.VMEM((B, H), wdtype),            # xn
                pltpu.VMEM((B, G, D), wdtype),         # rotated q of current kv head
                pltpu.VMEM((B, G, 1), jnp.float32),    # m
                pltpu.VMEM((B, G, 1), jnp.float32),    # l
                pltpu.VMEM((B, G, D), jnp.float32),    # acc
            ]),
        cost_estimate=pl.CostEstimate(
            flops=attn_flops, transcendentals=attn_trans,
            bytes_accessed=attn_bytes),
        compiler_params=pltpu.CompilerParams(
            dimension_semantics=("arbitrary", "arbitrary"),
            vmem_limit_bytes=vmem_limit),
    )(hs2d, cos_sel, sin_signed, mask_f, kT, v_cache,
      wq_r, params["wo"], params["ln1"])

    # ---- MLP (tiled over the intermediate dim) --------------------------------
    mlp_flops = 6 * B * H * I
    mlp_bytes = sum(int(a.size) * a.dtype.itemsize for a in
                    (h1, w_gu, params["wd"], params["ln2"])) + B * H * 4
    mlp_trans = B * I + B

    out2d = pl.pallas_call(
        functools.partial(_swiftkv_mlp_kernel, eps=eps),
        out_shape=jax.ShapeDtypeStruct((B, H), jnp.float32),
        grid_spec=pltpu.PrefetchScalarGridSpec(
            num_scalar_prefetch=0,
            grid=(I // ti,),
            in_specs=[
                pl.BlockSpec((B, H), lambda i: (0, 0)),            # h1
                pl.BlockSpec((2, H, ti), lambda i: (0, 0, i)),     # fused gate/up tile
                pl.BlockSpec((ti, H), lambda i: (i, 0)),           # wd tile
                pl.BlockSpec((1, H), lambda i: (0, 0)),            # ln2
            ],
            out_specs=pl.BlockSpec((B, H), lambda i: (0, 0)),
            scratch_shapes=[pltpu.VMEM((B, H), wdtype)]),          # xn2
        cost_estimate=pl.CostEstimate(
            flops=mlp_flops, transcendentals=mlp_trans,
            bytes_accessed=mlp_bytes),
        compiler_params=pltpu.CompilerParams(
            dimension_semantics=("arbitrary",),
            vmem_limit_bytes=vmem_limit),
    )(h1, w_gu, params["wd"], params["ln2"])

    return out2d.reshape(B, 1, H)


# ----------------------------------------------------------------------------
# Pure-JAX reference (mirrors the PyTorch forward; same mixed-precision policy:
# bf16 matmul operands, f32 accumulation / norms / softmax)
# ----------------------------------------------------------------------------
def rotate_half(x):
    half = x.shape[-1] // 2
    return jnp.concatenate([-x[..., half:], x[..., :half]], axis=-1)


def reference(hs, cos_sel, sin_sel, mask_bool, k_cache, v_cache, params,
              *, num_heads, num_kv_heads, head_dim, eps):
    B, _, H = hs.shape
    G = num_heads // num_kv_heads
    D = head_dim
    cdt = jnp.bfloat16

    x = hs[:, 0].astype(jnp.float32)                          # (B, H)
    var = jnp.mean(x * x, axis=-1, keepdims=True)
    xn = x * lax.rsqrt(var + eps) * params["ln1"][0]
    q = jnp.dot(xn.astype(cdt), params["wq"],
                preferred_element_type=jnp.float32)           # (B, NH*D)
    q = q.reshape(B, num_heads, D)
    cos = cos_sel[:, None, :]
    sin = sin_sel[:, None, :]
    q = q * cos + rotate_half(q) * sin
    q = (q / math.sqrt(D)).astype(cdt)
    k = jnp.repeat(k_cache, G, axis=1)                        # (B, NH, S, D)
    v = jnp.repeat(v_cache, G, axis=1)
    scores = jnp.einsum("bhd,bhsd->bhs", q, k,
                        preferred_element_type=jnp.float32)
    scores = jnp.where(mask_bool[:, None, :], -10000.0, scores)
    p = jax.nn.softmax(scores, axis=-1)
    attn = jnp.einsum("bhs,bhsd->bhd", p.astype(cdt), v,
                      preferred_element_type=jnp.float32)
    attn = attn.reshape(B, num_heads * D)
    attn_out = jnp.dot(attn.astype(cdt), params["wo"],
                       preferred_element_type=jnp.float32)
    h1 = x + attn_out
    var2 = jnp.mean(h1 * h1, axis=-1, keepdims=True)
    xn2 = (h1 * lax.rsqrt(var2 + eps) * params["ln2"][0]).astype(cdt)
    g = jnp.dot(xn2, params["wg"], preferred_element_type=jnp.float32)
    u = jnp.dot(xn2, params["wu"], preferred_element_type=jnp.float32)
    mlp = jnp.dot((g * jax.nn.sigmoid(g) * u).astype(cdt), params["wd"],
                  preferred_element_type=jnp.float32)
    return (h1 + mlp).reshape(B, 1, H)


# ----------------------------------------------------------------------------
if __name__ == "__main__":
    # Small synthetic config
    B = 2            # batch
    H = 32           # hidden_size
    NH = 4           # num_attention_heads
    KVH = 2          # num_key_value_heads
    D = H // NH      # head_dim = 8
    S = 8            # kv_seq_len (cache length)
    I = 64           # intermediate_size
    EPS = 1e-6
    ROPE_THETA = 10000.0

    key = jax.random.PRNGKey(0)
    ks = jax.random.split(key, 10)

    hs = jax.random.normal(ks[0], (B, 1, H), dtype=jnp.float32)
    k_cache = jax.random.normal(ks[1], (B, KVH, S, D), dtype=jnp.float32).astype(jnp.bfloat16)
    v_cache = jax.random.normal(ks[2], (B, KVH, S, D), dtype=jnp.float32).astype(jnp.bfloat16)

    # position_ids: padded positions; the module uses the argmax position per batch
    position_ids = jnp.array(
        [[0, 1, 2, 3, 4, 5, 0, 0],
         [0, 1, 2, 3, 0, 0, 0, 0]], dtype=jnp.int32)          # (B, S)
    pos_sel = position_ids[jnp.arange(B), jnp.argmax(position_ids, axis=1)]  # (B,)

    # rotary table (glue: table build + per-batch gather; rotary application is in-kernel)
    inv_freq = 1.0 / (ROPE_THETA ** (jnp.arange(0, D, 2, dtype=jnp.float32) / D))
    t = jnp.arange(S, dtype=jnp.float32)
    freqs = jnp.outer(t, inv_freq)                            # (S, D/2)
    emb = jnp.concatenate([freqs, freqs], axis=-1)            # (S, D)
    cos_table = jnp.cos(emb)
    sin_table = jnp.sin(emb)
    cos_sel = cos_table[pos_sel]                              # (B, D)
    sin_sel = sin_table[pos_sel]                              # (B, D)
    # sign-folded sin so the kernel can use roll() instead of rotate_half's concat
    half = D // 2
    sign = jnp.concatenate([-jnp.ones((half,), jnp.float32),
                            jnp.ones((half,), jnp.float32)])
    sin_signed = sin_sel * sign[None, :]                      # (B, D)

    # causal mask: True => masked out (key position beyond current position)
    mask_bool = jnp.arange(S)[None, :] > pos_sel[:, None]     # (B, S)
    mask_f = mask_bool.astype(jnp.float32)

    # deterministic parameter init (synthetic weights, no checkpoint);
    # weights stored in bf16, norm weights in f32.
    params = {
        "wq":  (0.05 * jax.random.normal(ks[3], (H, NH * D), dtype=jnp.float32)).astype(jnp.bfloat16),
        "wo":  (0.05 * jax.random.normal(ks[4], (NH * D, H), dtype=jnp.float32)).astype(jnp.bfloat16),
        "wg":  (0.05 * jax.random.normal(ks[5], (H, I), dtype=jnp.float32)).astype(jnp.bfloat16),
        "wu":  (0.05 * jax.random.normal(ks[6], (H, I), dtype=jnp.float32)).astype(jnp.bfloat16),
        "wd":  (0.05 * jax.random.normal(ks[7], (I, H), dtype=jnp.float32)).astype(jnp.bfloat16),
        "ln1": 1.0 + 0.05 * jax.random.normal(ks[8], (1, H), dtype=jnp.float32),
        "ln2": 1.0 + 0.05 * jax.random.normal(ks[9], (1, H), dtype=jnp.float32),
    }
    # TODO(synk): k_proj_swiftkv / v_proj_swiftkv exist in __init__ but are not used
    # in this forward (K/V come from the cache), so they are intentionally omitted.

    out = swiftkv_decoder_layer(
        hs, cos_sel, sin_signed, mask_f, k_cache, v_cache, params,
        num_heads=NH, num_kv_heads=KVH, head_dim=D, eps=EPS)
    out = jax.block_until_ready(out)

    ref = reference(
        hs, cos_sel, sin_sel, mask_bool, k_cache, v_cache, params,
        num_heads=NH, num_kv_heads=KVH, head_dim=D, eps=EPS)

    assert out.shape == (B, 1, H)
    assert jnp.allclose(out, ref, rtol=5e-3, atol=5e-3), (
        f"max abs err {jnp.max(jnp.abs(out - ref))}")

    print("KERNEL_OK")
</pallas_src>

<mosaic_0001>
module attributes {stable_mosaic.version = 11 : i64} {
  func.func @_swiftkv_attn_kernel(%arg0: i32, %arg1: i32, %arg2: memref<2x32xf32, #tpu.memory_space<vmem>>, %arg3: memref<2x8xf32, #tpu.memory_space<vmem>>, %arg4: memref<2x8xf32, #tpu.memory_space<vmem>>, %arg5: memref<2x8xf32, #tpu.memory_space<vmem>>, %arg6: memref<2x1x8x8xbf16, #tpu.memory_space<vmem>>, %arg7: memref<2x1x8x8xbf16, #tpu.memory_space<vmem>>, %arg8: memref<1x32x16xbf16, #tpu.memory_space<vmem>>, %arg9: memref<16x32xbf16, #tpu.memory_space<vmem>>, %arg10: memref<1x32xf32, #tpu.memory_space<vmem>>, %arg11: memref<2x32xf32, #tpu.memory_space<vmem>>, %arg12: memref<2x32xbf16, #tpu.memory_space<vmem>>, %arg13: memref<2x2x8xbf16, #tpu.memory_space<vmem>>, %arg14: memref<2x2x1xf32, #tpu.memory_space<vmem>>, %arg15: memref<2x2x1xf32, #tpu.memory_space<vmem>>, %arg16: memref<2x2x8xf32, #tpu.memory_space<vmem>>) attributes {dimension_semantics = [#tpu.dimension_semantics<arbitrary>, #tpu.dimension_semantics<arbitrary>], iteration_bounds = array<i64: 2, 1>, scalar_prefetch = 0 : i64, scratch_operands = 5 : i64, tpu.core_type = #tpu.core_type<tc>, window_params = [{pipeline_mode = #tpu.pipeline_mode<synchronous>, transform_indices = @transform_0, window_bounds = array<i64: 2, 32>}, {pipeline_mode = #tpu.pipeline_mode<synchronous>, transform_indices = @transform_1, window_bounds = array<i64: 2, 8>}, {pipeline_mode = #tpu.pipeline_mode<synchronous>, transform_indices = @transform_2, window_bounds = array<i64: 2, 8>}, {transform_indices = @transform_3, window_bounds = array<i64: 2, 8>}, {transform_indices = @transform_4, window_bounds = array<i64: 2, 1, 8, 8>}, {transform_indices = @transform_5, window_bounds = array<i64: 2, 1, 8, 8>}, {transform_indices = @transform_6, window_bounds = array<i64: 1, 32, 16>}, {transform_indices = @transform_7, window_bounds = array<i64: 16, 32>}, {pipeline_mode = #tpu.pipeline_mode<synchronous>, transform_indices = @transform_8, window_bounds = array<i64: 1, 32>}, {pipeline_mode = #tpu.pipeline_mode<synchronous>, transform_indices = @transform_9, window_bounds = array<i64: 2, 32>}]} {
    %c0_i32 = arith.constant 0 : i32
    %0 = arith.cmpi eq, %arg0, %c0_i32 : i32
    %c0_i32_0 = arith.constant 0 : i32
    %1 = arith.cmpi eq, %arg1, %c0_i32_0 : i32
    %2 = arith.andi %0, %1 : i1
    %3 = arith.extui %2 : i1 to i32
    %c0_i32_1 = arith.constant 0 : i32
    %4 = arith.cmpi ne, %3, %c0_i32_1 : i32
    scf.if %4 {
      %c0_41 = arith.constant 0 : index
      %c0_42 = arith.constant 0 : index
      %48 = vector.load %arg2[%c0_41, %c0_42] : memref<2x32xf32, #tpu.memory_space<vmem>>, vector<2x32xf32>
      %49 = arith.mulf %48, %48 : vector<2x32xf32>
      %cst_43 = arith.constant dense<0.000000e+00> : vector<2xf32>
      %50 = vector.multi_reduction <add>, %49, %cst_43 [1] : vector<2x32xf32> to vector<2xf32>
      %51 = vector.shape_cast %50 : vector<2xf32> to vector<2x1xf32>
      %cst_44 = arith.constant 3.200000e+01 : f32
      %52 = vector.broadcast %cst_44 : f32 to vector<2x1xf32>
      %53 = arith.divf %51, %52 : vector<2x1xf32>
      %cst_45 = arith.constant 9.99999997E-7 : f32
      %54 = vector.broadcast %cst_45 : f32 to vector<2x1xf32>
      %55 = arith.addf %53, %54 : vector<2x1xf32>
      %56 = math.rsqrt %55 : vector<2x1xf32>
      %57 = vector.broadcast %56 : vector<2x1xf32> to vector<2x32xf32>
      %58 = arith.mulf %48, %57 : vector<2x32xf32>
      %c0_46 = arith.constant 0 : index
      %c0_47 = arith.constant 0 : index
      %59 = vector.load %arg10[%c0_46, %c0_47] : memref<1x32xf32, #tpu.memory_space<vmem>>, vector<1x32xf32>
      %60 = vector.broadcast %59 : vector<1x32xf32> to vector<2x32xf32>
      %61 = arith.mulf %58, %60 : vector<2x32xf32>
      %62 = arith.truncf %61 : vector<2x32xf32> to vector<2x32xbf16>
      %c0_48 = arith.constant 0 : index
      %c0_49 = arith.constant 0 : index
      %63 = vector.load %arg12[%c0_48, %c0_49] : memref<2x32xbf16, #tpu.memory_space<vmem>>, vector<2x32xbf16>
      tpu.vector_store %arg12[%c0_48, %c0_49], %62 {strides = array<i32>} : memref<2x32xbf16, #tpu.memory_space<vmem>>, vector<2x32xbf16>,
      %c0_50 = arith.constant 0 : index
      %c0_51 = arith.constant 0 : index
      %64 = vector.load %arg11[%c0_50, %c0_51] : memref<2x32xf32, #tpu.memory_space<vmem>>, vector<2x32xf32>
      tpu.vector_store %arg11[%c0_50, %c0_51], %48 {strides = array<i32>} : memref<2x32xf32, #tpu.memory_space<vmem>>, vector<2x32xf32>,
    } else {
    }
    %c0_i32_2 = arith.constant 0 : i32
    %5 = arith.cmpi eq, %arg1, %c0_i32_2 : i32
    %6 = arith.extui %5 : i1 to i32
    %c0_i32_3 = arith.constant 0 : i32
    %7 = arith.cmpi ne, %6, %c0_i32_3 : i32
    scf.if %7 {
      %c0_41 = arith.constant 0 : index
      %c0_42 = arith.constant 0 : index
      %48 = vector.load %arg12[%c0_41, %c0_42] : memref<2x32xbf16, #tpu.memory_space<vmem>>, vector<2x32xbf16>
      %c0_43 = arith.constant 0 : index
      %c0_44 = arith.constant 0 : index
      %c0_45 = arith.constant 0 : index
      %49 = vector.load %arg8[%c0_43, %c0_44, %c0_45] : memref<1x32x16xbf16, #tpu.memory_space<vmem>>, vector<1x32x16xbf16>
      %50 = vector.shape_cast %49 : vector<1x32x16xbf16> to vector<32x16xbf16>
      %cst_46 = arith.constant dense<0.000000e+00> : vector<2x16xf32>
      %51 = tpu.matmul %48, %50, %cst_46 {dimension_numbers = #tpu.dot_dimension_numbers<[1], [0], [0], [1], [0, 0, 1, 1], [], []>} : vector<2x32xbf16>, vector<32x16xbf16>, vector<2x16xf32> -> vector<2x16xf32>
      %52 = vector.shape_cast %51 : vector<2x16xf32> to vector<2x2x8xf32>
      %c0_47 = arith.constant 0 : index
      %c0_48 = arith.constant 0 : index
      %53 = vector.load %arg3[%c0_47, %c0_48] : memref<2x8xf32, #tpu.memory_space<vmem>>, vector<2x8xf32>
      %54 = vector.shape_cast %53 : vector<2x8xf32> to vector<2x1x8xf32>
      %c0_49 = arith.constant 0 : index
      %c0_50 = arith.constant 0 : index
      %55 = vector.load %arg4[%c0_49, %c0_50] : memref<2x8xf32, #tpu.memory_space<vmem>>, vector<2x8xf32>
      %56 = vector.shape_cast %55 : vector<2x8xf32> to vector<2x1x8xf32>
      %57 = vector.extract_strided_slice %52 {offsets = [0, 0, 4], sizes = [2, 2, 4], strides = [1, 1, 1]} : vector<2x2x8xf32> to vector<2x2x4xf32>
      %58 = vector.extract_strided_slice %52 {offsets = [0, 0, 0], sizes = [2, 2, 4], strides = [1, 1, 1]} : vector<2x2x8xf32> to vector<2x2x4xf32>
      %59 = tpu.concatenate %57, %58 in 2 : vector<2x2x4xf32>, vector<2x2x4xf32> -> vector<2x2x8xf32>
      %60 = vector.broadcast %54 : vector<2x1x8xf32> to vector<2x2x8xf32>
      %61 = arith.mulf %52, %60 : vector<2x2x8xf32>
      %62 = vector.broadcast %56 : vector<2x1x8xf32> to vector<2x2x8xf32>
      %63 = arith.mulf %59, %62 : vector<2x2x8xf32>
      %64 = arith.addf %61, %63 : vector<2x2x8xf32>
      %cst_51 = arith.constant 0.353553385 : f32
      %65 = vector.broadcast %cst_51 : f32 to vector<2x2x8xf32>
      %66 = arith.mulf %64, %65 : vector<2x2x8xf32>
      %67 = arith.truncf %66 : vector<2x2x8xf32> to vector<2x2x8xbf16>
      %c0_52 = arith.constant 0 : index
      %c0_53 = arith.constant 0 : index
      %c0_54 = arith.constant 0 : index
      %68 = vector.load %arg13[%c0_52, %c0_53, %c0_54] : memref<2x2x8xbf16, #tpu.memory_space<vmem>>, vector<2x2x8xbf16>
      tpu.vector_store %arg13[%c0_52, %c0_53, %c0_54], %67 {strides = array<i32>} : memref<2x2x8xbf16, #tpu.memory_space<vmem>>, vector<2x2x8xbf16>,
      %cst_55 = arith.constant 0xFF800000 : f32
      %69 = vector.broadcast %cst_55 : f32 to vector<2x2x1xf32>
      %c0_56 = arith.constant 0 : index
      %c0_57 = arith.constant 0 : index
      %c0_58 = arith.constant 0 : index
      %70 = vector.load %arg14[%c0_56, %c0_57, %c0_58] : memref<2x2x1xf32, #tpu.memory_space<vmem>>, vector<2x2x1xf32>
      tpu.vector_store %arg14[%c0_56, %c0_57, %c0_58], %69 {strides = array<i32>} : memref<2x2x1xf32, #tpu.memory_space<vmem>>, vector<2x2x1xf32>,
      %cst_59 = arith.constant 0.000000e+00 : f32
      %71 = vector.broadcast %cst_59 : f32 to vector<2x2x1xf32>
      %c0_60 = arith.constant 0 : index
      %c0_61 = arith.constant 0 : index
      %c0_62 = arith.constant 0 : index
      %72 = vector.load %arg15[%c0_60, %c0_61, %c0_62] : memref<2x2x1xf32, #tpu.memory_space<vmem>>, vector<2x2x1xf32>
      tpu.vector_store %arg15[%c0_60, %c0_61, %c0_62], %71 {strides = array<i32>} : memref<2x2x1xf32, #tpu.memory_space<vmem>>, vector<2x2x1xf32>,
      %cst_63 = arith.constant 0.000000e+00 : f32
      %73 = vector.broadcast %cst_63 : f32 to vector<2x2x8xf32>
      %c0_64 = arith.constant 0 : index
      %c0_65 = arith.constant 0 : index
      %c0_66 = arith.constant 0 : index
      %74 = vector.load %arg16[%c0_64, %c0_65, %c0_66] : memref<2x2x8xf32, #tpu.memory_space<vmem>>, vector<2x2x8xf32>
      tpu.vector_store %arg16[%c0_64, %c0_65, %c0_66], %73 {strides = array<i32>} : memref<2x2x8xf32, #tpu.memory_space<vmem>>, vector<2x2x8xf32>,
    } else {
    }
    %c0 = arith.constant 0 : index
    %c0_4 = arith.constant 0 : index
    %c0_5 = arith.constant 0 : index
    %8 = vector.load %arg13[%c0, %c0_4, %c0_5] : memref<2x2x8xbf16, #tpu.memory_space<vmem>>, vector<2x2x8xbf16>
    %c0_6 = arith.constant 0 : index
    %c0_7 = arith.constant 0 : index
    %c0_8 = arith.constant 0 : index
    %c0_9 = arith.constant 0 : index
    %9 = vector.load %arg6[%c0_6, %c0_7, %c0_8, %c0_9] : memref<2x1x8x8xbf16, #tpu.memory_space<vmem>>, vector<2x1x8x8xbf16>
    %10 = vector.shape_cast %9 : vector<2x1x8x8xbf16> to vector<2x8x8xbf16>
    %c0_10 = arith.constant 0 : index
    %c0_11 = arith.constant 0 : index
    %c0_12 = arith.constant 0 : index
    %c0_13 = arith.constant 0 : index
    %11 = vector.load %arg7[%c0_10, %c0_11, %c0_12, %c0_13] : memref<2x1x8x8xbf16, #tpu.memory_space<vmem>>, vector<2x1x8x8xbf16>
    %12 = vector.shape_cast %11 : vector<2x1x8x8xbf16> to vector<2x8x8xbf16>
    %cst = arith.constant dense<0.000000e+00> : vector<2x2x8xf32>
    %13 = tpu.matmul %8, %10, %cst {dimension_numbers = #tpu.dot_dimension_numbers<[2], [1], [1], [2], [0, 0, 0, 1, 1, 2], [0], [0]>} : vector<2x2x8xbf16>, vector<2x8x8xbf16>, vector<2x2x8xf32> -> vector<2x2x8xf32>
    %c0_14 = arith.constant 0 : index
    %c0_15 = arith.constant 0 : index
    %14 = vector.load %arg5[%c0_14, %c0_15] : memref<2x8xf32, #tpu.memory_space<vmem>>, vector<2x8xf32>
    %15 = vector.shape_cast %14 : vector<2x8xf32> to vector<2x1x8xf32>
    %cst_16 = arith.constant 0.000000e+00 : f32
    %16 = vector.broadcast %cst_16 : f32 to vector<2x1x8xf32>
    %17 = arith.cmpf one, %15, %16 : vector<2x1x8xf32>
    %cst_17 = arith.constant -1.000000e+04 : f32
    %18 = vector.shape_cast %17 : vector<2x1x8xi1> to vector<2x1x8xi1>
    %19 = vector.broadcast %18 : vector<2x1x8xi1> to vector<2x2x8xi1>
    %20 = vector.broadcast %cst_17 : f32 to vector<2x2x8xf32>
    %21 = arith.select %19, %20, %13 : vector<2x2x8xi1>, vector<2x2x8xf32>
    %c0_18 = arith.constant 0 : index
    %c0_19 = arith.constant 0 : index
    %c0_20 = arith.constant 0 : index
    %22 = vector.load %arg14[%c0_18, %c0_19, %c0_20] : memref<2x2x1xf32, #tpu.memory_space<vmem>>, vector<2x2x1xf32>
    %cst_21 = arith.constant dense<0xFF800000> : vector<2x2xf32>
    %23 = vector.multi_reduction <maximumf>, %21, %cst_21 [2] : vector<2x2x8xf32> to vector<2x2xf32>
    %24 = vector.shape_cast %23 : vector<2x2xf32> to vector<2x2x1xf32>
    %25 = arith.maximumf %22, %24 : vector<2x2x1xf32>
    %26 = arith.subf %22, %25 : vector<2x2x1xf32>
    %27 = math.exp %26 : vector<2x2x1xf32>
    %28 = vector.broadcast %25 : vector<2x2x1xf32> to vector<2x2x8xf32>
    %29 = arith.subf %21, %28 : vector<2x2x8xf32>
    %30 = math.exp %29 : vector<2x2x8xf32>
    %c0_22 = arith.constant 0 : index
    %c0_23 = arith.constant 0 : index
    %c0_24 = arith.constant 0 : index
    %31 = vector.load %arg15[%c0_22, %c0_23, %c0_24] : memref<2x2x1xf32, #tpu.memory_space<vmem>>, vector<2x2x1xf32>
    %32 = arith.mulf %27, %31 : vector<2x2x1xf32>
    %cst_25 = arith.constant dense<0.000000e+00> : vector<2x2xf32>
    %33 = vector.multi_reduction <add>, %30, %cst_25 [2] : vector<2x2x8xf32> to vector<2x2xf32>
    %34 = vector.shape_cast %33 : vector<2x2xf32> to vector<2x2x1xf32>
    %35 = arith.addf %32, %34 : vector<2x2x1xf32>
    %c0_26 = arith.constant 0 : index
    %c0_27 = arith.constant 0 : index
    %c0_28 = arith.constant 0 : index
    %36 = vector.load %arg15[%c0_26, %c0_27, %c0_28] : memref<2x2x1xf32, #tpu.memory_space<vmem>>, vector<2x2x1xf32>
    tpu.vector_store %arg15[%c0_26, %c0_27, %c0_28], %35 {strides = array<i32>} : memref<2x2x1xf32, #tpu.memory_space<vmem>>, vector<2x2x1xf32>,
    %c0_29 = arith.constant 0 : index
    %c0_30 = arith.constant 0 : index
    %c0_31 = arith.constant 0 : index
    %37 = vector.load %arg16[%c0_29, %c0_30, %c0_31] : memref<2x2x8xf32, #tpu.memory_space<vmem>>, vector<2x2x8xf32>
    %38 = vector.broadcast %27 : vector<2x2x1xf32> to vector<2x2x8xf32>
    %39 = arith.mulf %38, %37 : vector<2x2x8xf32>
    %40 = arith.truncf %30 : vector<2x2x8xf32> to vector<2x2x8xbf16>
    %cst_32 = arith.constant dense<0.000000e+00> : vector<2x2x8xf32>
    %41 = tpu.matmul %40, %12, %cst_32 {dimension_numbers = #tpu.dot_dimension_numbers<[2], [1], [1], [2], [0, 0, 0, 1, 1, 2], [0], [0]>} : vector<2x2x8xbf16>, vector<2x8x8xbf16>, vector<2x2x8xf32> -> vector<2x2x8xf32>
    %42 = arith.addf %39, %41 : vector<2x2x8xf32>
    %c0_33 = arith.constant 0 : index
    %c0_34 = arith.constant 0 : index
    %c0_35 = arith.constant 0 : index
    %43 = vector.load %arg16[%c0_33, %c0_34, %c0_35] : memref<2x2x8xf32, #tpu.memory_space<vmem>>, vector<2x2x8xf32>
    tpu.vector_store %arg16[%c0_33, %c0_34, %c0_35], %42 {strides = array<i32>} : memref<2x2x8xf32, #tpu.memory_space<vmem>>, vector<2x2x8xf32>,
    %c0_36 = arith.constant 0 : index
    %c0_37 = arith.constant 0 : index
    %c0_38 = arith.constant 0 : index
    %44 = vector.load %arg14[%c0_36, %c0_37, %c0_38] : memref<2x2x1xf32, #tpu.memory_space<vmem>>, vector<2x2x1xf32>
    tpu.vector_store %arg14[%c0_36, %c0_37, %c0_38], %25 {strides = array<i32>} : memref<2x2x1xf32, #tpu.memory_space<vmem>>, vector<2x2x1xf32>,
    %c0_i32_39 = arith.constant 0 : i32
    %45 = arith.cmpi eq, %arg1, %c0_i32_39 : i32
    %46 = arith.extui %45 : i1 to i32
    %c0_i32_40 = arith.constant 0 : i32
    %47 = arith.cmpi ne, %46, %c0_i32_40 : i32
    scf.if %47 {
      %c0_41 = arith.constant 0 : index
      %c0_42 = arith.constant 0 : index
      %c0_43 = arith.constant 0 : index
      %48 = vector.load %arg16[%c0_41, %c0_42, %c0_43] : memref<2x2x8xf32, #tpu.memory_space<vmem>>, vector<2x2x8xf32>
      %c0_44 = arith.constant 0 : index
      %c0_45 = arith.constant 0 : index
      %c0_46 = arith.constant 0 : index
      %49 = vector.load %arg15[%c0_44, %c0_45, %c0_46] : memref<2x2x1xf32, #tpu.memory_space<vmem>>, vector<2x2x1xf32>
      %50 = vector.broadcast %49 : vector<2x2x1xf32> to vector<2x2x8xf32>
      %51 = arith.divf %48, %50 : vector<2x2x8xf32>
      %c0_47 = arith.constant 0 : index
      %c0_48 = arith.constant 0 : index
      %52 = vector.load %arg11[%c0_47, %c0_48] : memref<2x32xf32, #tpu.memory_space<vmem>>, vector<2x32xf32>
      %53 = vector.shape_cast %51 : vector<2x2x8xf32> to vector<2x16xf32>
      %54 = arith.truncf %53 : vector<2x16xf32> to vector<2x16xbf16>
      %c0_49 = arith.constant 0 : index
      %c0_50 = arith.constant 0 : index
      %55 = vector.load %arg9[%c0_49, %c0_50] : memref<16x32xbf16, #tpu.memory_space<vmem>>, vector<16x32xbf16>
      %cst_51 = arith.constant dense<0.000000e+00> : vector<2x32xf32>
      %56 = tpu.matmul %54, %55, %cst_51 {dimension_numbers = #tpu.dot_dimension_numbers<[1], [0], [0], [1], [0, 0, 1, 1], [], []>} : vector<2x16xbf16>, vector<16x32xbf16>, vector<2x32xf32> -> vector<2x32xf32>
      %57 = arith.addf %52, %56 : vector<2x32xf32>
      %c0_52 = arith.constant 0 : index
      %c0_53 = arith.constant 0 : index
      %58 = vector.load %arg11[%c0_52, %c0_53] : memref<2x32xf32, #tpu.memory_space<vmem>>, vector<2x32xf32>
      tpu.vector_store %arg11[%c0_52, %c0_53], %57 {strides = array<i32>} : memref<2x32xf32, #tpu.memory_space<vmem>>, vector<2x32xf32>,
    } else {
    }
    return
  }
  func.func @transform_0(%arg0: i32, %arg1: i32) -> (i32, i32) {
    %c0_i32 = arith.constant 0 : i32
    %c0_i32_0 = arith.constant 0 : i32
    %c0_i32_1 = arith.constant 0 : i32
    return %c0_i32, %c0_i32_0 : i32, i32
  }
  func.func @transform_1(%arg0: i32, %arg1: i32) -> (i32, i32) {
    %c0_i32 = arith.constant 0 : i32
    %c0_i32_0 = arith.constant 0 : i32
    %c0_i32_1 = arith.constant 0 : i32
    return %c0_i32, %c0_i32_0 : i32, i32
  }
  func.func @transform_2(%arg0: i32, %arg1: i32) -> (i32, i32) {
    %c0_i32 = arith.constant 0 : i32
    %c0_i32_0 = arith.constant 0 : i32
    %c0_i32_1 = arith.constant 0 : i32
    return %c0_i32, %c0_i32_0 : i32, i32
  }
  func.func @transform_3(%arg0: i32, %arg1: i32) -> (i32, i32) {
    %c0_i32 = arith.constant 0 : i32
    %c0_i32_0 = arith.constant 0 : i32
    return %c0_i32, %arg1 : i32, i32
  }
  func.func @transform_4(%arg0: i32, %arg1: i32) -> (i32, i32, i32, i32) {
    %c0_i32 = arith.constant 0 : i32
    %c0_i32_0 = arith.constant 0 : i32
    %c0_i32_1 = arith.constant 0 : i32
    return %c0_i32, %arg0, %c0_i32_0, %arg1 : i32, i32, i32, i32
  }
  func.func @transform_5(%arg0: i32, %arg1: i32) -> (i32, i32, i32, i32) {
    %c0_i32 = arith.constant 0 : i32
    %c0_i32_0 = arith.constant 0 : i32
    %c0_i32_1 = arith.constant 0 : i32
    return %c0_i32, %arg0, %arg1, %c0_i32_0 : i32, i32, i32, i32
  }
  func.func @transform_6(%arg0: i32, %arg1: i32) -> (i32, i32, i32) {
    %c0_i32 = arith.constant 0 : i32
    %c0_i32_0 = arith.constant 0 : i32
    %c0_i32_1 = arith.constant 0 : i32
    return %arg0, %c0_i32, %c0_i32_0 : i32, i32, i32
  }
  func.func @transform_7(%arg0: i32, %arg1: i32) -> (i32, i32) {
    %c0_i32 = arith.constant 0 : i32
    %c0_i32_0 = arith.constant 0 : i32
    return %arg0, %c0_i32 : i32, i32
  }
  func.func @transform_8(%arg0: i32, %arg1: i32) -> (i32, i32) {
    %c0_i32 = arith.constant 0 : i32
    %c0_i32_0 = arith.constant 0 : i32
    %c0_i32_1 = arith.constant 0 : i32
    return %c0_i32, %c0_i32_0 : i32, i32
  }
  func.func @transform_9(%arg0: i32, %arg1: i32) -> (i32, i32) {
    %c0_i32 = arith.constant 0 : i32
    %c0_i32_0 = arith.constant 0 : i32
    %c0_i32_1 = arith.constant 0 : i32
    return %c0_i32, %c0_i32_0 : i32, i32
  }
}

</mosaic_0001>

<bundles_post_ra>
// kernel: tpu_custom_call.1
= control target key start
LH: loop header
LB: loop body
LE: loop exit
PB: predicated region body
PF: predicated region fallthrough
CT: control target
= control target key end

     0   :  { %s2493_s0 = inlined_call_operand.hbm [shape: f32[2,32], index: 0, kind: input, shape index: {}]   ;;  %s2494_s1 = inlined_call_operand.hbm [shape: f32[2,8], index: 1, kind: input, shape index: {}]   ;;  %s2495_s2 = inlined_call_operand.hbm [shape: f32[2,8], index: 2, kind: input, shape index: {}]   ;;  %s2496_s3 = inlined_call_operand.hbm [shape: f32[2,8], index: 3, kind: input, shape index: {}]   ;;  %s2497_s4 = inlined_call_operand.hbm [shape: bf16[2,2,8,8], index: 4, kind: input, shape index: {}]   ;;  %s2498_s5 = inlined_call_operand.hbm [shape: bf16[2,2,8,8], index: 5, kind: input, shape index: {}]   ;;  %s2499_s6 = inlined_call_operand.hbm [shape: bf16[2,32,16], index: 6, kind: input, shape index: {}]   ;;  %s2500_s7 = inlined_call_operand.hbm [shape: bf16[32,32], index: 7, kind: input, shape index: {}]   ;;  %s2501_s8 = inlined_call_operand.hbm [shape: f32[1,32], index: 8, kind: input, shape index: {}]   ;;  %s2502_s9 = inlined_call_operand.hbm [shape: f32[2,32], index: 9, kind: output, shape index: {}]  }
   0x1   :  { %2526 = sst [smem:[#allocation35_spill]] %s2493_s0 }
   0x2   :  { %2527 = sst [smem:[#allocation36_spill]] %s2497_s4 }
   0x3   :  { %2528 = sst [smem:[#allocation37_spill]] %s2500_s7 }
   0x4   :  { %2529 = sst [smem:[#allocation38_spill]] %s2501_s8 }
   0x5   :  { %2530 = sst [smem:[#allocation39_spill]] %s2502_s9 }
   0x6   :  { %14 = vsyncpa [#allocation8], 0 }
   0x7   :  { %15 = vsyncpa [#allocation11], 0 }
   0x8   :  { %16 = vsyncpa [#allocation14], 0 }
   0x9   :  { %17 = vsyncpa [#allocation9], 0  ;;  %s2011_s30 = smov 0   ;;  %s2013_s10 = smov 0  }
   0xa   :  { %s2015_s11 = smov 0   ;;  %s2017_s12 = smov 0  }
   0xb   :  { %s2019_s13 = smov 0   ;;  %s2021_s14 = smov 0  }
   0xc LB: > { %2531 = sst [smem:[#allocation27_spill]] %s1920_s10  ;;  %s2040_s15 = sadd.s32 4294967295, %s1936_s14   ;;  %s1936_s14 = sphi %s2021_s14, %s23_s14   ;;  %s1932_s13 = sphi %s2019_s13, %s2585_s13   ;;  %s1928_s12 = sphi %s2017_s12, %s2584_s12   ;;  %s1924_s11 = sphi %s2015_s11, %s2583_s11   ;;  %s1920_s10 = sphi %s2013_s10, %s2582_s10   ;;  %s1916_s30 = sphi %s2011_s30, %s2579_s30  }
   0xd   : > { %2532 = sst [smem:[#allocation28_spill]] %s1928_s12  ;;  %p146_p0 = scmp.ne.s32.totalorder %s1920_s10, %s1916_s30 }
   0xe   : > { %2533 = sst [smem:[#allocation29_spill]] %s1936_s14  ;;  %p2503_p1 = scmp.eq.s32.totalorder %s2040_s15, 0 }
   0xf   : > { %2534 = sst [smem:[#allocation30_spill]] %s2040_s15  ;;  %p1321_p2 = scmp.ge.s32.totalorder %s1936_s14, 1 }
  0x10   : > { %p279_p3 = scmp.lt.s32.totalorder %s1936_s14, 3  ;;  %p2048_p4 = por %p2503_p1, %p146_p0 }
  0x11   : > { %s1938_s18 = smov [#allocation7]   ;;  %s35_s21 = sadd.s32 1, %s1932_s13 }
  0x12   : > { %s2535_s16 = scalar_select %p2048_p4, 1, 0 }
  0x13   : > { %p2052_p5 = pnand %p1321_p2, %p279_p3  ;;  %s292_s19 = sshll.u32 %s1938_s18, 4  ;;  %s293_s19 = int_to_ptr.vmem [resolvable:$true] %s292_s19 }
  0x14   : > { %2536 = sst [smem:[#allocation31_spill]] %s2535_s16  ;;  %s133_s22 = sadd.s32 1, %s1924_s11 }
  0x15   : > { %s2537_s17 = scalar_select %p2052_p5, 1, 0 }
  0x16   : > { %p1452_p6 = pneg %p2052_p5  ;;  %p2066_p8 = scmp.ge.s32.totalorder %s35_s21, 2 }
  0x17   : > { %2538 = sst [smem:[#allocation32_spill]] %s2537_s17  ;;  %s2541_s0 = sld [smem:[#allocation35_spill]] }
  0x18   : > { %p2060_p7 = pnand %p1452_p6, %p2503_p1 }
  0x19   : > { %s2540_s23 = scalar_select %p2066_p8, 1, 0 }
  0x1a   : > { %s2539_s20 = scalar_select %p2060_p7, 1, 0 }
  0x1b   : > { %p2078_p10 = pneg %p2060_p7 }
  0x1d   : > { %s1580_s26 = scalar_lea.hbm %s2541_s0, 32 }
  0x1e   : > { %p1581_p9 = scmp.ne.s32.totalorder %s2541_s0, %s1580_s26  ;;  %p1587_p13 = scmp.lt.u32.totalorder %s1580_s26, %s2541_s0 }
  0x1f   : > { %s2542_s29 = scalar_select %p2078_p10, 1, 0 }
  0x20   : > { %p1583_p11 = pnand %p2078_p10, %p1581_p9 }
  0x22   : > { %p1584_p12 = pneg %p1583_p11 }
  0x24   : > { %p1589_p0 = pnand %p1587_p13, %p1584_p12 }
  0x26   : > { %1592 = shalt.err (!%p1589_p0)
}
  0x27   : > { %s1593_s24 = scalar_lea.vmem %s293_s19, 32  ;;  %p1601_p1 = scmp.lt.s32.totalorder %s293_s19, %s293_s19 }
  0x28   : > { %p1594_p2 = scmp.ne.s32.totalorder %s293_s19, %s1593_s24  ;;  %p1602_p4 = scmp.lt.s32.totalorder %s1593_s24, %s1593_s24 }
  0x2a   : > { %p1596_p3 = pnand %p1594_p2, %p2078_p10  ;;  %p1603_p5 = por %p1602_p4, %p1601_p1 }
  0x2c   : > { %p1597_p6 = pneg %p1596_p3 }
  0x2e   : > { %p1604_p8 = pnand %p1603_p5, %p1597_p6 }
  0x30   : > { %1607 = shalt.err (!%p1604_p8)
}
  0x31   : > { %1455 = dma.hbm_to_vmem [thread:$0]  (!%p2060_p7), %s2541_s0, 32, %s293_s19, [#allocation8]  }
  0x32   : > { %p2543_p1 = scmp.ne.s32.totalorder %s2540_s23, 0  ;;  %p140_p4 = scmp.ne.s32.totalorder %s1924_s11, %s1920_s10 }
  0x33   : > { %p141_p5 = scmp.eq.s32.totalorder %s1936_s14, 0  ;;  %p1486_p8 = scmp.lt.s32.totalorder %s1936_s14, 2 }
  0x34   : > { %s2587_s21 = smov (%p2543_p1, %s35_s21), 0  ;;  %s349_s28 = sand.u32 1, %s1936_s14  }
  0x35   : > { %2544 = sst [smem:[#allocation33_spill]] %s2587_s21  ;;  %s128_s26 = ssub.s32 %s1932_s13, %s2587_s21 }
  0x36   : > { %p131_p9 = scmp.eq.s32.totalorder %s128_s26, 0  ;;  %p142_p11 = por %p141_p5, %p140_p4 }
  0x37   : > { %s2506_s30 = sand.u32 1, %s1924_s11   ;;  %s2508_s19 = sshll.u32 %s1932_s13, 6 }
  0x38   : > { %s2109_s18 = scalar_select %p131_p9, %s1924_s11, %s133_s22  }
  0x39   : > { %s2113_s24 = sshll.u32 %s2506_s30, 3  ;;  %s2546_s4 = sld [smem:[#allocation36_spill]] }
  0x3a   : > { %2545 = sst [smem:[#allocation34_spill]] %s2109_s18  ;;  %s353_s26 = scalar_lea.vmem [#allocation15], %s2113_s24 }
  0x3b   : > { %s360_s0 = sshll.u32 %s353_s26, 4  ;;  %p2126_p12 = pnand %p1486_p8, %p142_p11  ;;  %s2124_s0 = int_to_ptr.vmem [resolvable:$true] %s360_s0 }
  0x3c   : > { %s2130_s30 = scalar_lea.sflag [#allocation8], %s349_s28 }
  0x3d   : > { %s2547_s22 = scalar_select %p2126_p12, 1, 0 }
  0x3e   : > { %p2136_p0 = pneg %p2126_p12 }
  0x3f   : > { %s2121_s27 = scalar_lea.hbm %s2546_s4, %s2508_s19  ;;  %s1613_s19 = scalar_lea.hbm %s2546_s4, 256 }
  0x40   : > { %s1608_s21 = scalar_lea.hbm %s2121_s27, 128  ;;  %p1614_p6 = scmp.lt.u32.totalorder %s2121_s27, %s2546_s4 }
  0x41   : > { %p1609_p13 = scmp.ne.s32.totalorder %s2121_s27, %s1608_s21  ;;  %p1615_p1 = scmp.lt.u32.totalorder %s1613_s19, %s1608_s21 }
  0x42   : > { %p1617_p5 = scmp.lt.u32.totalorder %s1608_s21, %s2121_s27 }
  0x43   : > { %p1611_p2 = pnand %p2136_p0, %p1609_p13  ;;  %p1616_p4 = por %p1615_p1, %p1614_p6 }
  0x45   : > { %p1612_p3 = pneg %p1611_p2  ;;  %p1618_p8 = por %p1617_p5, %p1616_p4 }
  0x47   : > { %p1619_p9 = pnand %p1618_p8, %p1612_p3 }
  0x49   : > { %1622 = shalt.err (!%p1619_p9)
}
  0x4a   : > { %s1623_s28 = scalar_lea.vmem %s2124_s0, 128  ;;  %s1939_s25 = smov [#allocation15]  }
  0x4b   : > { %p1624_p11 = scmp.ne.s32.totalorder %s2124_s0, %s1623_s28  ;;  %s1628_s26 = sshll.u32 %s1939_s25, 4  ;;  %s1629_s26 = int_to_ptr.vmem [resolvable:$false] %s1628_s26 }
  0x4c   : > { %s1630_s14 = scalar_lea.vmem %s1629_s26, 256  ;;  %p1631_p7 = scmp.lt.s32.totalorder %s2124_s0, %s1629_s26 }
  0x4d   : > { %p1626_p13 = pnand %p1624_p11, %p2136_p0  ;;  %p1632_p10 = scmp.lt.s32.totalorder %s1630_s14, %s1623_s28 }
  0x4f   : > { %p1627_p2 = pneg %p1626_p13  ;;  %p1633_p6 = por %p1632_p10, %p1631_p7 }
  0x51   : > { %p1634_p1 = pnand %p1633_p6, %p1627_p2 }
  0x53   : > { %1637 = shalt.err (!%p1634_p1)
}
  0x54   : > { %s1940_s21 = smov 128   ;;  %s1941_s18 = smov 64  }
  0x55   : > { %s1942_s19 = smov 4   ;;  %s1943_s25 = smov [#allocation10]  }
  0x56   : > { %1471 = dma.hbm_to_vmem [thread:$0]  (!%p2126_p12), %s2121_s27, 128, %s2124_s0, %s2130_s30, %s1940_s21, %s1941_s18, %s1942_s19  }
  0x57   : > { %s303_s28 = sshll.u32 %s1943_s25, 4  ;;  %s2549_s26 = sshll.u32 %s1932_s13, 6  ;;  %s304_s28 = int_to_ptr.vmem [resolvable:$true] %s303_s28 }
  0x58   : > { %s2168_s9 = scalar_lea.hbm %s2498_s5, %s2549_s26  ;;  %s374_s12 = scalar_lea.vmem [#allocation16], %s2113_s24 }
  0x59   : > { %s381_s16 = sshll.u32 %s374_s12, 4  ;;  %s1638_s17 = scalar_lea.hbm %s2494_s1, 32  ;;  %s2189_s16 = int_to_ptr.vmem [resolvable:$true] %s381_s16 }
  0x5a   : > { %p1639_p7 = scmp.ne.s32.totalorder %s2494_s1, %s1638_s17  ;;  %p2550_p10 = scmp.ne.s32.totalorder %s2542_s29, 0 }
  0x5b   : > { %p1645_p5 = scmp.lt.u32.totalorder %s1638_s17, %s2494_s1 }
  0x5c   : > { %p1641_p3 = pnand %p1639_p7, %p2550_p10 }
  0x5e   : > { %p1642_p4 = pneg %p1641_p3 }
  0x60   : > { %p1647_p8 = pnand %p1645_p5, %p1642_p4 }
  0x62   : > { %1650 = shalt.err (!%p1647_p8)
}
  0x63   : > { %s1651_s4 = scalar_lea.vmem %s304_s28, 32  ;;  %p1659_p2 = scmp.lt.s32.totalorder %s304_s28, %s304_s28 }
  0x64   : > { %p1652_p9 = scmp.ne.s32.totalorder %s304_s28, %s1651_s4  ;;  %p1660_p6 = scmp.lt.s32.totalorder %s1651_s4, %s1651_s4 }
  0x66   : > { %p1654_p11 = pnand %p1652_p9, %p2550_p10  ;;  %p1661_p1 = por %p1660_p6, %p1659_p2 }
  0x68   : > { %p1655_p13 = pneg %p1654_p11 }
  0x6a   : > { %p1662_p12 = pnand %p1661_p1, %p1655_p13 }
  0x6c   : > { %1665 = shalt.err (!%p1662_p12)
}
  0x6d   : > { %p2551_p7 = scmp.ne.s32.totalorder %s2539_s20, 0  ;;  %s1666_s10 = scalar_lea.hbm %s2168_s9, 128 }
  0x6e   : > { %p1667_p3 = scmp.ne.s32.totalorder %s2168_s9, %s1666_s10  ;;  %s1671_s17 = scalar_lea.hbm %s2498_s5, 256 }
  0x6f   : > { %1458 = dma.hbm_to_vmem [thread:$0]  (!%p2551_p7), %s2494_s1, 32, %s304_s28, [#allocation11]  }
  0x70   : > { %p1669_p4 = pnand %p1667_p3, %p2136_p0  ;;  %p1672_p12 = scmp.lt.u32.totalorder %s2168_s9, %s2498_s5 }
  0x71   : > { %p1673_p8 = scmp.lt.u32.totalorder %s1671_s17, %s1666_s10  ;;  %p1675_p11 = scmp.lt.u32.totalorder %s1666_s10, %s2168_s9 }
  0x72   : > { %p1670_p5 = pneg %p1669_p4 }
  0x73   : > { %p1674_p9 = por %p1673_p8, %p1672_p12 }
  0x75   : > { %p1676_p13 = por %p1675_p11, %p1674_p9 }
  0x77   : > { %p1677_p2 = pnand %p1676_p13, %p1670_p5 }
  0x79   : > { %1680 = shalt.err (!%p1677_p2)
}
  0x7a   : > { %s1681_s28 = scalar_lea.vmem %s2189_s16, 128  ;;  %s1944_s14 = smov [#allocation16]  }
  0x7b   : > { %p1682_p6 = scmp.ne.s32.totalorder %s2189_s16, %s1681_s28  ;;  %s1686_s0 = sshll.u32 %s1944_s14, 4  ;;  %s1687_s0 = int_to_ptr.vmem [resolvable:$false] %s1686_s0 }
  0x7c   : > { %s1688_s27 = scalar_lea.vmem %s1687_s0, 256  ;;  %p1689_p4 = scmp.lt.s32.totalorder %s2189_s16, %s1687_s0 }
  0x7d   : > { %p1684_p1 = pnand %p1682_p6, %p2136_p0  ;;  %p1690_p7 = scmp.lt.s32.totalorder %s1688_s27, %s1681_s28 }
  0x7f   : > { %p1685_p3 = pneg %p1684_p1  ;;  %p1691_p12 = por %p1690_p7, %p1689_p4 }
  0x81   : > { %p1692_p8 = pnand %p1691_p12, %p1685_p3 }
  0x83   : > { %1695 = shalt.err (!%p1692_p8)
}
  0x84   : > { %p2552_p5 = scmp.ne.s32.totalorder %s2547_s22, 0  ;;  %s1945_s4 = smov [#allocation12]  }
  0x85   : > { %s314_s7 = sshll.u32 %s1945_s4, 4  ;;  %s2553_s8 = sand.u32 1, %s1924_s11   ;;  %s315_s7 = int_to_ptr.vmem [resolvable:$true] %s314_s7 }
  0x86   : > { %1474 = dma.hbm_to_vmem [thread:$0]  (!%p2552_p5), %s2168_s9, 128, %s2189_s16, %s2130_s30, %s1940_s21, %s1941_s18, %s1942_s19  }
  0x87   : > { %s1332_s10 = sshll.u32 %s2553_s8, 4  ;;  %s1696_s17 = scalar_lea.hbm %s2495_s2, 32 }
  0x88   : > { %p1697_p7 = scmp.ne.s32.totalorder %s2495_s2, %s1696_s17  ;;  %p1703_p13 = scmp.lt.u32.totalorder %s1696_s17, %s2495_s2 }
  0x8a   : > { %p1699_p9 = pnand %p1697_p7, %p2550_p10 }
  0x8c   : > { %p1700_p11 = pneg %p1699_p9 }
  0x8e   : > { %p1705_p2 = pnand %p1703_p13, %p1700_p11 }
  0x90   : > { %1708 = shalt.err (!%p1705_p2)
}
  0x91   : > { %s1709_s9 = scalar_lea.vmem %s315_s7, 32  ;;  %p1717_p4 = scmp.lt.s32.totalorder %s315_s7, %s315_s7 }
  0x92   : > { %p1710_p6 = scmp.ne.s32.totalorder %s315_s7, %s1709_s9  ;;  %p1718_p12 = scmp.lt.s32.totalorder %s1709_s9, %s1709_s9 }
  0x94   : > { %p1712_p1 = pnand %p1710_p6, %p2550_p10  ;;  %p1719_p8 = por %p1718_p12, %p1717_p4 }
  0x96   : > { %p1713_p3 = pneg %p1712_p1 }
  0x98   : > { %p1720_p5 = pnand %p1719_p8, %p1713_p3 }
  0x9a   : > { %1723 = shalt.err (!%p1720_p5)
}
  0x9b   : > { %p2554_p7 = scmp.ne.s32.totalorder %s2539_s20, 0  ;;  %s1366_s0 = sshll.u32 %s1932_s13, 8 }
  0x9c   : > { %s395_s27 = scalar_lea.vmem [#allocation17], %s1332_s10  ;;  %s2240_s15 = scalar_lea.hbm %s2499_s6, %s1366_s0 }
  0x9d   : > { %1461 = dma.hbm_to_vmem [thread:$0]  (!%p2554_p7), %s2495_s2, 32, %s315_s7, [#allocation11]  }
  0x9e   : > { %s402_s4 = sshll.u32 %s395_s27, 4  ;;  %s1724_s17 = scalar_lea.hbm %s2240_s15, 256  ;;  %s2242_s4 = int_to_ptr.vmem [resolvable:$true] %s402_s4 }
  0x9f   : > { %p1725_p5 = scmp.ne.s32.totalorder %s2240_s15, %s1724_s17  ;;  %s1729_s10 = scalar_lea.hbm %s2499_s6, 512 }
  0xa0   : > { %p1730_p13 = scmp.lt.u32.totalorder %s2240_s15, %s2499_s6  ;;  %p1731_p2 = scmp.lt.u32.totalorder %s1729_s10, %s1724_s17 }
  0xa1   : > { %p1727_p9 = pnand %p1725_p5, %p2136_p0  ;;  %p1733_p1 = scmp.lt.u32.totalorder %s1724_s17, %s2240_s15 }
  0xa2   : > { %p1732_p6 = por %p1731_p2, %p1730_p13 }
  0xa3   : > { %p1728_p11 = pneg %p1727_p9 }
  0xa4   : > { %p1734_p3 = por %p1733_p1, %p1732_p6 }
  0xa6   : > { %p1735_p4 = pnand %p1734_p3, %p1728_p11 }
  0xa8   : > { %1738 = shalt.err (!%p1735_p4)
}
  0xa9   : > { %s1739_s14 = scalar_lea.vmem %s2242_s4, 256  ;;  %s1946_s9 = smov [#allocation17]  }
  0xaa   : > { %p1740_p12 = scmp.ne.s32.totalorder %s2242_s4, %s1739_s14  ;;  %s1744_s16 = sshll.u32 %s1946_s9, 4  ;;  %s1745_s16 = int_to_ptr.vmem [resolvable:$false] %s1744_s16 }
  0xab   : > { %s1746_s21 = scalar_lea.vmem %s1745_s16, 512  ;;  %p1747_p9 = scmp.lt.s32.totalorder %s2242_s4, %s1745_s16 }
  0xac   : > { %p1742_p8 = pnand %p1740_p12, %p2136_p0  ;;  %p1748_p7 = scmp.lt.s32.totalorder %s1746_s21, %s1739_s14 }
  0xae   : > { %p1743_p5 = pneg %p1742_p8  ;;  %p1749_p13 = por %p1748_p7, %p1747_p9 }
  0xb0   : > { %p1750_p2 = pnand %p1749_p13, %p1743_p5 }
  0xb2   : > { %1753 = shalt.err (!%p1750_p2)
}
  0xb3   : > { %p2555_p11 = scmp.ne.s32.totalorder %s2547_s22, 0  ;;  %s1947_s0 = smov [#allocation13]  }
  0xb4   : > { %s327_s27 = sshll.u32 %s1947_s0, 4  ;;  %s1948_s8 = smov [#allocation19]   ;;  %s328_s27 = int_to_ptr.vmem [resolvable:$true] %s327_s27 }
  0xb5   : > { %1477 = dma.hbm_to_vmem [thread:$0]  (!%p2555_p11), %s2240_s15, 256, %s2242_s4, %s2130_s30, %s1941_s18, %s1941_s18, %s1942_s19  }
  0xb6   : > { %s338_s12 = sshll.u32 %s1948_s8, 4  ;;  %s1754_s25 = scalar_lea.hbm %s2496_s3, 32  ;;  %s2269_s12 = int_to_ptr.vmem [resolvable:$true] %s338_s12 }
  0xb7   : > { %p1755_p7 = scmp.ne.s32.totalorder %s2496_s3, %s1754_s25  ;;  %p1761_p3 = scmp.lt.u32.totalorder %s1754_s25, %s2496_s3 }
  0xb9   : > { %p1757_p6 = pnand %p1755_p7, %p2550_p10 }
  0xbb   : > { %p1758_p1 = pneg %p1757_p6 }
  0xbd   : > { %p1763_p4 = pnand %p1761_p3, %p1758_p1 }
  0xbf   : > { %1766 = shalt.err (!%p1763_p4)
}
  0xc0   : > { %s1767_s15 = scalar_lea.vmem %s328_s27, 32  ;;  %p1775_p9 = scmp.lt.s32.totalorder %s328_s27, %s328_s27 }
  0xc1   : > { %p1768_p12 = scmp.ne.s32.totalorder %s328_s27, %s1767_s15  ;;  %p1776_p13 = scmp.lt.s32.totalorder %s1767_s15, %s1767_s15 }
  0xc3   : > { %p1770_p8 = pnand %p1768_p12, %p2550_p10  ;;  %p1777_p2 = por %p1776_p13, %p1775_p9 }
  0xc5   : > { %p1771_p5 = pneg %p1770_p8 }
  0xc7   : > { %p1778_p11 = pnand %p1777_p2, %p1771_p5 }
  0xc9   : > { %1781 = shalt.err (!%p1778_p11)
}
  0xca   : > { %p2556_p7 = scmp.ne.s32.totalorder %s2539_s20, 0  ;;  %s2557_s0 = sld [smem:[#allocation38_spill]] }
  0xcc   : > { %1464 = dma.hbm_to_vmem [thread:$0]  (!%p2556_p7), %s2496_s3, 32, %s328_s27, [#allocation14]  }
  0xd0   : > { %s1782_s8 = scalar_lea.hbm %s2557_s0, 16 }
  0xd1   : > { %p1783_p6 = scmp.ne.s32.totalorder %s2557_s0, %s1782_s8  ;;  %p1789_p11 = scmp.lt.u32.totalorder %s1782_s8, %s2557_s0 }
  0xd3   : > { %p1785_p1 = pnand %p1783_p6, %p2550_p10 }
  0xd5   : > { %p1786_p3 = pneg %p1785_p1 }
  0xd7   : > { %p1791_p4 = pnand %p1789_p11, %p1786_p3 }
  0xd9   : > { %1794 = shalt.err (!%p1791_p4)
}
  0xda   : > { %s1795_s27 = scalar_lea.vmem %s2269_s12, 16  ;;  %s1802_s26 = scalar_lea.vmem %s2269_s12, 32 }
  0xdb   : > { %p1796_p12 = scmp.ne.s32.totalorder %s2269_s12, %s1795_s27  ;;  %p1803_p9 = scmp.lt.s32.totalorder %s2269_s12, %s2269_s12 }
  0xdc   : > { %p1804_p13 = scmp.lt.s32.totalorder %s1802_s26, %s1795_s27 }
  0xdd   : > { %p1798_p8 = pnand %p1796_p12, %p2550_p10 }
  0xde   : > { %p1805_p2 = por %p1804_p13, %p1803_p9 }
  0xdf   : > { %p1799_p5 = pneg %p1798_p8 }
  0xe1   : > { %p1806_p6 = pnand %p1805_p2, %p1799_p5 }
  0xe3   : > { %1809 = shalt.err (!%p1806_p6)
}
  0xe4   : > { %1467 = dma.hbm_to_vmem [thread:$0]  (!%p2556_p7), %s2557_s0, 16, %s2269_s12, [#allocation11]  }
  0xe5   : > { %s1367_s29 = sshll.u32 %s1932_s13, 7  ;;  %s2558_s9 = sld [smem:[#allocation37_spill]] }
  0xe6   : > { %s416_s21 = scalar_lea.vmem [#allocation18], %s2113_s24 }
  0xe7   : > { %s423_s20 = sshll.u32 %s416_s21, 4  ;;  %s2320_s20 = int_to_ptr.vmem [resolvable:$true] %s423_s20 }
  0xeb   : > { %s2317_s16 = scalar_lea.hbm %s2558_s9, %s1367_s29  ;;  %s1815_s7 = scalar_lea.hbm %s2558_s9, 256 }
  0xec   : > { %s1810_s8 = scalar_lea.hbm %s2317_s16, 128  ;;  %p1816_p7 = scmp.lt.u32.totalorder %s2317_s16, %s2558_s9 }
  0xed   : > { %p1811_p10 = scmp.ne.s32.totalorder %s2317_s16, %s1810_s8  ;;  %p1817_p11 = scmp.lt.u32.totalorder %s1815_s7, %s1810_s8 }
  0xee   : > { %p1819_p12 = scmp.lt.u32.totalorder %s1810_s8, %s2317_s16 }
  0xef   : > { %p1813_p1 = pnand %p1811_p10, %p2136_p0  ;;  %p1818_p4 = por %p1817_p11, %p1816_p7 }
  0xf1   : > { %p1814_p3 = pneg %p1813_p1  ;;  %p1820_p8 = por %p1819_p12, %p1818_p4 }
  0xf3   : > { %p1821_p5 = pnand %p1820_p8, %p1814_p3 }
  0xf5   : > { %1824 = shalt.err (!%p1821_p5)
}
  0xf6   : > { %s1825_s24 = scalar_lea.vmem %s2320_s20, 128  ;;  %s1949_s27 = smov [#allocation18]  }
  0xf7   : > { %p1826_p9 = scmp.ne.s32.totalorder %s2320_s20, %s1825_s24  ;;  %s1830_s26 = sshll.u32 %s1949_s27, 4  ;;  %s1831_s26 = int_to_ptr.vmem [resolvable:$false] %s1830_s26 }
  0xf8   : > { %s1832_s28 = scalar_lea.vmem %s1831_s26, 256  ;;  %p1833_p6 = scmp.lt.s32.totalorder %s2320_s20, %s1831_s26 }
  0xf9   : > { %p1828_p13 = pnand %p1826_p9, %p2136_p0  ;;  %p1834_p10 = scmp.lt.s32.totalorder %s1832_s28, %s1825_s24 }
  0xfb   : > { %p1829_p2 = pneg %p1828_p13  ;;  %p1835_p1 = por %p1834_p10, %p1833_p6 }
  0xfd   : > { %p1836_p7 = pnand %p1835_p1, %p1829_p2 }
  0xff   : > { %1839 = shalt.err (!%p1836_p7)
}
 0x100   : > { %p2559_p3 = scmp.ne.s32.totalorder %s2547_s22, 0  ;;  %s2560_s23 = sld [smem:[#allocation32_spill]] }
 0x102   : > { %1480 = dma.hbm_to_vmem [thread:$0]  (!%p2559_p3), %s2317_s16, 128, %s2320_s20, %s2130_s30, %s1941_s18, %s1941_s18, %s1942_s19  }
 0x106   : > { %p2561_p0 = scmp.ne.s32.totalorder %s2560_s23, 0 }
 0x107   : > { %s2562_s4 = sld [smem:[#allocation30_spill]] (!%p2561_p0) }
 0x108   : > { %435 = sbr.rel (%p2561_p0) target bundleno = 2103 (0x837), region = 56 }
 0x10d   : > { %p2563_p11 = scmp.eq.s32.totalorder (!%p2561_p0), %s2562_s4, 0 }
 0x10f   : > { %1891 = dma.done.wait (%p2563_p11), [#allocation8], 32   ;;  %p2564_p4 = pmov %p2563_p11 }
 0x111   : > { %1893 = vsyncadd (%p2564_p4), [#allocation8], 4294967264  ;;  %p2565_p12 = pmov %p2564_p4 }
 0x112   : > { %p2566_p8 = pmov %p2564_p4 }
 0x113   : > { %1895 = dma.done.wait (%p2565_p12), [#allocation11], 64  }
 0x114   : > { %1897 = vsyncadd (%p2566_p8), [#allocation11], 4294967232  ;;  %p2567_p5 = pmov %p2564_p4 }
 0x115   : > { %p2568_p9 = pmov %p2564_p4 }
 0x116   : > { %1899 = dma.done.wait (%p2567_p5), [#allocation14], 32  }
 0x117   : > { %1901 = vsyncadd (%p2568_p9), [#allocation14], 4294967264  ;;  %s2569_s30 = sld [smem:[#allocation27_spill]]  ;;  %s2570_s22 = sld [smem:[#allocation31_spill]] }
 0x118   : > { %s453_s18 = sand.u32 1, %s2562_s4  }
 0x119   : > { %s454_s15 = scalar_lea.sflag [#allocation8], %s453_s18 }
 0x11d   : > { %s455_s19 = sand.u32 1, %s2569_s30   ;;  %p2571_p13 = scmp.ne.s32.totalorder %s2570_s22, 0 }
 0x11e   : > { %s2363_s29 = sshll.u32 %s455_s19, 3 }
 0x11f   : > { %s457_s14 = scalar_lea.vmem [#allocation15], %s2363_s29 }
 0x120   : > { %1903 = dma.done.wait (%p2571_p13), %s454_s15, 640  }
 0x121   : > { %1905 = vsyncadd (%p2571_p13), %s454_s15, 4294966656  ;;  %s2370_s16 = sshll.u32 %s455_s19, 4  ;;  %s466_s21 = scalar_lea.vmem [#allocation16], %s2363_s29 }
 0x122   : > { %s475_s20 = scalar_lea.vmem [#allocation17], %s2370_s16  ;;  %s484_s8 = scalar_lea.vmem [#allocation18], %s2363_s29 }
 0x123   : > { %p2572_p2 = pmov %p2564_p4 }
 0x125   : > { %1907 = dma.done.wait (%p2572_p2), [#allocation11], 16   ;;  %p2573_p6 = pmov %p2572_p2 }
 0x126   : > { %s2574_s12 = sld [smem:[#allocation28_spill]] }
 0x127   : > { %1909 = vsyncadd (%p2573_p6), [#allocation11], 4294967280 }
 0x12c   : > { %p535_p10 = scmp.eq.s32.totalorder %s2574_s12, 0 }
 0x12d   : > { %v541_v0 = vld [vmem:[#allocation7] sm:$0x3] (%p535_p10)  ;;  %vm543_vm0 = vcmask (%p535_p10), 254976   ;;  %v1349_v7 = vld [vmem:[#allocation19] ss:$0 sm:$0xff] (%p535_p10)  ;;  %vm561_vm1 = vcmask (%p535_p10), 253952  }
 0x12e   : > { %540 = sbr.rel (!%p535_p10) target bundleno = 469 (0x1d5), region = 96  ;;  %v542_v1 = vmul.f32 (%p535_p10), %v541_v0, %v541_v0  ;;  %563 = vst.msk [vmem:[#allocation20] sm:$0x3] (%p535_p10), %vm543_vm0, %v541_v0 }
 0x130   : > { %v544_v2 = vsel (%p535_p10), %vm543_vm0, %v542_v1, 0.0 }
 0x131   : > { %545 = vadd.xlane.f32.xlu0 (%p535_p10), %v544_v2 }
 0x1be   : > { %v546_v3 = vpop.xlane.xlu0 %545 }
 0x1bf   : > { %v548_v4 = vmul.f32 0.03125, %v546_v3 }
 0x1c1   : > { %v549_v5 = vadd.f32 1e-06, %v548_v4 }
 0x1c3   : > { %1561 = vrsqrt.f32 %v549_v5 }
 0x1cd   : > { %v1562_v6 = vpop.eup %1561 }
 0x1ce   : > { %v551_v8 = vmul.f32 %v1562_v6, %v541_v0 }
 0x1d0   : > { %v559_v9 = vmul.f32 %v1349_v7, %v551_v8 }
 0x1d2   : > { %v560_v10 = vpack.c.bf16 %v559_v9, %v559_v9 }
 0x1d4   : > { %562 = vst.msk [vmem:[#allocation2] sm:$0x1] %vm561_vm1, %v560_v10 }
 0x1d5 PF: > { %v1565_v11 = vld [vmem:[%s475_s20] sm:$0xff]   ;;  %v1950_v12 = vmov 0.0   ;;  %v1566_v13 = vld [vmem:[%s475_s20 + $0x8] sm:$0xff]   ;;  %vm1951_vm2 = vmmov 0   ;;  %vm584_vm3 = vcmask 261120   ;;  %s1952_s17 = smov 120   ;;  %v636_v21 = vlaneseq }
 0x1d6   : > { %1382 = vmatprep.subr.bf16.mxu0 %v1950_v12  ;;  %1390 = vmatprep.subr.bf16.mxu1 %v1950_v12  ;;  %v1953_v19 = vmov 1934713408   ;;  %v749_v28 = vld [vmem:[%s457_s14] sm:$0xf]  ;;  %vm757_vm4 = vcmask 1043456   ;;  %s1954_s7 = smov 4  }
 0x1d7   : > { %1383 = vmatpush3.bf16.msra.mxu0 %v1565_v11  ;;  %1386 = vmatprep.mubr.msk.bf16.mxu0 %vm1951_vm2, %v1950_v12  ;;  %v634_v20 = vunpack.c.l.s4 %v1953_v19  ;;  %v637_v23 = vshrl.u32 %v636_v21, 7  ;;  %s1955_s25 = smov 124   ;;  %v759_v29 = vsel %vm757_vm4, %v749_v28, 0  ;;  %v1956_v31 = vmov 1966171168   ;;  %s2575_s10 = sld [smem:[#allocation30_spill]] }
 0x1d8   : > { %1384 = vmatprep.subr.bf16.mxu0 %v1950_v12  ;;  %1392 = vmatprep.mubr.msk.bf16.mxu1 %vm1951_vm2, %v1950_v12  ;;  %v652_v32 = vunpack.c.l.s4 %v1956_v31  ;;  %v1353_v35 = vld.sshfl [vmem:[#allocation10] sm:$0x11 pattern:$0x75316420]  ;;  %vm703_vm5 = vcmask 31744   ;;  %vm736_vm6 = vcmask 57344  }
 0x1d9   : > { %v635_v22 = vunpack.c.0.s8 %v634_v20  ;;  %1391 = vmatpush3.bf16.msra.mxu1 %v759_v29  ;;  %v1354_v36 = vld.sshfl [vmem:[#allocation12] sm:$0x11 pattern:$0x75316420]  ;;  %v2398_v37 = vsub.s32 0, %v637_v23  ;;  %v650_v40 = vcombine.high %v1353_v35, %v1353_v35  ;;  %vm753_vm7 = vcmask 64512  }
 0x1da   : > { %1396 = vmatprep.subr.bf16.mxu1 %v1950_v12  ;;  %v653_v33 = vunpack.c.0.s8 %v652_v32  ;;  %v674_v41 = vcombine.high %v1354_v36, %v1354_v36  ;;  %v750_v0 = vld [vmem:[%s457_s14 + $0x4] sm:$0xf]  ;;  %v1957_v4 = vmov 0   ;;  %vm744_vm8 = vcmask 58368   ;;  %s1959_s24 = smov 8   ;;  %s1960_s27 = smov [#allocation20]  }
 0x1db   : > { %1385 = vmatpush3.bf16.msra.mxu0 %v1566_v13  ;;  %v567_v14 = vld [vmem:[#allocation2] sm:$0x1]  ;;  %v2390_v24 = vsub.s32 %v635_v22, %v637_v23  ;;  %v805_v1 = vsel %vm757_vm4, %v750_v0, 0  ;;  %1563 = vset.pattern.permute.xlu0 %v1957_v4  ;;  %745 = vst.msk [vmem:[#allocation6] sm:$0x3] %vm744_vm8, %v1950_v12  ;;  %vm739_vm9 = vcmask 1024  }
 0x1dc   : > { %1402 = vmatprep.subr.bf16.mxu0 %v1950_v12  ;;  %v656_v34 = vsub.s32 %v653_v33, %v637_v23  ;;  %1564 = vset.pattern.permute.xlu1 %v1957_v4  ;;  %746 = vst.msk [vmem:[#allocation6 + $0x2] sm:$0x3] %vm744_vm8, %v1950_v12  ;;  %v1958_v5 = vmov -inf   ;;  %vm1096_vm14 = vcmask 130048   ;;  %s1150_s26 = sshll.u32 %s1960_s27, 4  ;;  %vm1141_vm15 = vcmask 254976   ;;  %s1151_s26 = int_to_ptr.vmem [resolvable:$true] %s1150_s26 }
 0x1dd   : > { %740 = vst.msk [vmem:[#allocation4] sm:$0x3] %vm739_vm9, %v1958_v5  ;;  %741 = vst.msk [vmem:[#allocation4 + $0x2] sm:$0x3] %vm739_vm9, %v1958_v5  ;;  %p1492_p1 = scmp.eq.s32.totalorder %s2575_s10, 1  ;;  %s1840_s28 = scalar_lea.vmem %s1151_s26, 32 }
 0x1de   : > { %1387 = vmatmul.mubr.msk.bf16.vlgmr.msra.gmra.mrb[0].mxu0 %vm584_vm3, %v567_v14  ;;  %v657_v38 = vrot.slane %v1353_v35, %v656_v34  ;;  %v681_v39 = vrot.slane %v1354_v36, %v656_v34  ;;  %v664_v44 = vrot.slane %v650_v40, %v656_v34  ;;  %v688_v45 = vrot.slane %v674_v41, %v656_v34  ;;  %v1357_v6 = vld.sshfl [vmem:[#allocation13] sm:$0x11 pattern:$0x75316420]  ;;  %v751_v36 = vld [vmem:[%s466_s21] sm:$0xf]  ;;  %p1841_p7 = scmp.ne.s32.totalorder %s1151_s26, %s1840_s28  ;;  %p1847_p11 = scmp.lt.s32.totalorder %s1151_s26, %s1151_s26 }
 0x1df   : > { %1404 = vmatprep.mubr.msk.bf16.mxu0 %vm1951_vm2, %v1950_v12  ;;  %742 = vst.msk [vmem:[#allocation5] sm:$0x3] %vm739_vm9, %v1950_v12  ;;  %743 = vst.msk [vmem:[#allocation5 + $0x2] sm:$0x3] %vm739_vm9, %v1950_v12  ;;  %v863_v7 = vrot.slane %v1357_v6, %v656_v34  ;;  %v856_v8 = vcombine.high %v1357_v6, %v1357_v6  ;;  %p1848_p4 = scmp.lt.s32.totalorder %s1840_s28, %s1840_s28 }
 0x1e0   : > { %v709_v42 = vrot.slane %v657_v38, %v2398_v37  ;;  %v721_v43 = vrot.slane %v681_v39, %v2398_v37  ;;  %v713_v51 = vrot.slane %v664_v44, %v2398_v37  ;;  %v725_v52 = vrot.slane %v688_v45, %v2398_v37  ;;  %v752_v38 = vld [vmem:[%s466_s21 + $0x4] sm:$0xf]  ;;  %p1842_p3 = pnand %p1841_p7, %p1492_p1 }
 0x1e1   : > { %vm873_vm10 = vcmp.ne.f32.partialorder %v863_v7, 0.0  ;;  %v870_v10 = vrot.slane %v856_v8, %v656_v34  ;;  %v1003_v39 = vsel %vm757_vm4, %v752_v38, 0  ;;  %p1849_p12 = por %p1848_p4, %p1847_p11 }
 0x1e2   : > { %v875_v9 = vsel %vm873_vm10, 1, %v1957_v4  ;;  %p1843_p0 = pneg %p1842_p3 }
 0x1e3   : > { %v880_v11 = vrot.slane %v875_v9, %v2398_v37  ;;  %vm874_vm11 = vcmp.ne.f32.partialorder %v870_v10, 0.0 }
 0x1e4   : > { %v876_v13 = vsel %vm874_vm11, 1, %v1957_v4  ;;  %v889_v28 = vld [vmem:[#allocation4] sm:$0x3]  ;;  %v890_v32 = vld [vmem:[#allocation4 + $0x2] sm:$0x3]  ;;  %p1850_p8 = pnand %p1849_p12, %p1843_p0 }
 0x1e5   : > { %vm885_vm12 = vcmp.eq.s32.totalorder %v880_v11, 1  ;;  %v884_v19 = vrot.slane %v876_v13, %v2398_v37  ;;  %v957_v37 = vsel %vm757_vm4, %v751_v36, 0  ;;  %v938_v11 = vld [vmem:[#allocation6 + $0x2] sm:$0x3] }
 0x1e6   : > { %1403 = vmatpush3.bf16.msra.mxu0 %v957_v37 }
 0x1e7   : > { %vm886_vm13 = vcmp.eq.s32.totalorder %v884_v19, 1  ;;  %1414 = vmatprep.subr.bf16.mxu0 %v1950_v12 }
 0x2b1   : > { %v622_v15 = vpop.f32.mrb[0].mxu0 }
 0x2b2   : > { %629 = vrot.lane.b32.xlu0 %v622_v15, %s1952_s17  ;;  %v1388_v16 = vpop.f32.mrb[1].mxu0 }
 0x2b3   : > { %v625_v17 = vpop.f32.mrb[2].mxu0 }
 0x2b4   : > { %v1389_v18 = vpop.f32.mrb[3].mxu0 }
 0x324   : > { %v630_v25 = vpop.permute.xlu0 %629 }
 0x325   : > { %v632_v26 = vcombine.low %v622_v15, %v630_v25 }
 0x327   : > { %v639_v27 = vrot.slane %v632_v26, %v2390_v24 }
 0x329   : > { %697 = vrot.lane.b32.xlu1 %v639_v27, %s1954_s7  ;;  %691 = vrot.lane.b32.xlu0 %v639_v27, %s1955_s25  ;;  %v640_v30 = vcombine.high %v639_v27, %v1950_v12  ;;  %v716_v49 = vmul.f32 %v709_v42, %v639_v27 }
 0x32b   : > { %v717_v58 = vmul.f32 %v713_v51, %v640_v30 }
 0x32d   : > { %699 = vrot.lane.b32.xlu0 %v640_v30, %s1954_s7  ;;  %693 = vrot.lane.b32.xlu1 %v640_v30, %s1955_s25 }
 0x39b   : > { %v698_v46 = vpop.permute.xlu1 %697  ;;  %v692_v47 = vpop.permute.xlu0 %691 }
 0x39c   : > { %v704_v48 = vsel %vm703_vm5, %v692_v47, %v698_v46 }
 0x39d   : > { %v728_v50 = vmul.f32 %v721_v43, %v704_v48 }
 0x39f   : > { %v730_v53 = vadd.f32 %v728_v50, %v716_v49  ;;  %v700_v54 = vpop.permute.xlu0 %699  ;;  %v694_v55 = vpop.permute.xlu1 %693 }
 0x3a0   : > { %v705_v56 = vsel %vm703_vm5, %v694_v55, %v700_v54 }
 0x3a1   : > { %v732_v57 = vmul.f32 0.35355338, %v730_v53  ;;  %v729_v59 = vmul.f32 %v725_v52, %v705_v56  ;;  %v922_v56 = vld [vmem:[#allocation5] sm:$0x3] }
 0x3a3   : > { %v734_v60 = vpack.c.bf16 %v732_v57, %v732_v57  ;;  %v731_v61 = vadd.f32 %v729_v59, %v717_v58 }
 0x3a5   : > { %737 = vst.msk [vmem:[#allocation3] sm:$0x1] %vm736_vm6, %v734_v60  ;;  %v733_v62 = vmul.f32 0.35355338, %v731_v61  ;;  %v923_v60 = vld [vmem:[#allocation5 + $0x2] sm:$0x3] }
 0x3a7   : > { %v735_v63 = vpack.c.bf16 %v733_v62, %v733_v62 }
 0x3a9   : > { %738 = vst.msk [vmem:[#allocation3 + $0x1] sm:$0x1] %vm736_vm6, %v735_v63 }
 0x3ac   : > { %v747_v2 = vld [vmem:[#allocation3] sm:$0x1] }
 0x3ad   : > { %1393 = vmatmul.mubr.msk.bf16.vlgmr.msra.gmra.mrb[0].mxu1 %vm753_vm7, %v747_v2  ;;  %v1567_v2 = vld [vmem:[%s484_s8] sm:$0xff]  }
 0x3ae   : > { %1397 = vmatpush3.bf16.msra.mxu1 %v805_v1  ;;  %1398 = vmatprep.mubr.msk.bf16.mxu1 %vm1951_vm2, %v1950_v12 }
 0x3af   : > { %1408 = vmatprep.subr.bf16.mxu1 %v1950_v12 }
 0x3b0   : > { %v748_v3 = vld [vmem:[#allocation3 + $0x1] sm:$0x1] }
 0x3b5   : > { %1399 = vmatmul.mubr.msk.bf16.vlgmr.msra.gmra.mrb[4].mxu1 %vm753_vm7, %v748_v3  ;;  %v937_v3 = vld [vmem:[#allocation6] sm:$0x3] }
 0x3b6   : > { %1410 = vmatprep.mubr.msk.bf16.mxu1 %vm1951_vm2, %v1950_v12  ;;  %1409 = vmatpush3.bf16.msra.mxu1 %v1003_v39 }
 0x480   : > { %v795_v14 = vpop.f32.mrb[0].mxu1 }
 0x481   : > { %v887_v15 = vsel %vm885_vm12, -10000.0, %v795_v14  ;;  %v1394_v16 = vpop.f32.mrb[1].mxu1 }
 0x482   : > { %v798_v17 = vpop.f32.mrb[2].mxu1  ;;  %v892_v18 = vsel %vm744_vm8, %v887_v15, -inf }
 0x483   : > { %v1395_v20 = vpop.f32.mrb[3].mxu1  ;;  %893 = vmax.xlane.f32.xlu1 %v892_v18 }
 0x488   : > { %v841_v21 = vpop.f32.mrb[4].mxu1 }
 0x489   : > { %v888_v22 = vsel %vm886_vm13, -10000.0, %v841_v21  ;;  %v1400_v23 = vpop.f32.mrb[5].mxu1 }
 0x48a   : > { %v844_v25 = vpop.f32.mrb[6].mxu1  ;;  %v895_v26 = vsel %vm744_vm8, %v888_v22, -inf }
 0x48b   : > { %896 = vmax.xlane.f32.xlu0 %v895_v26  ;;  %v1401_v27 = vpop.f32.mrb[7].mxu1 }
 0x510   : > { %v894_v29 = vpop.xlane.xlu1 %893 }
 0x511   : > { %v898_v30 = vmax.f32 %v889_v28, %v894_v29 }
 0x513   : > { %v900_v31 = vsub.f32 %v889_v28, %v898_v30  ;;  %1049 = vst.msk [vmem:[#allocation4] sm:$0x3] %vm739_vm9, %v898_v30  ;;  %908 = vperm.xlu0 %1563, %v898_v30  }
 0x515   : > { %v902_v49 = vmul.f32 1.442695, %v900_v31 }
 0x518   : > { %v897_v33 = vpop.xlane.xlu0 %896 }
 0x519   : > { %v899_v34 = vmax.f32 %v890_v32, %v897_v33 }
 0x51b   : > { %v901_v35 = vsub.f32 %v890_v32, %v899_v34  ;;  %1050 = vst.msk [vmem:[#allocation4 + $0x2] sm:$0x3] %vm739_vm9, %v899_v34  ;;  %913 = vperm.xlu1 %1564, %v899_v34  }
 0x51d   : > { %v904_v51 = vmul.f32 1.442695, %v901_v35  ;;  %v1068_v35 = vld [vmem:[#allocation20] sm:$0x3] }
 0x592   : > { %v909_v40 = vpop.permute.xlu0 %908 }
 0x593   : > { %v916_v41 = vsub.f32 %v887_v15, %v909_v40 }
 0x595   : > { %v918_v42 = vmul.f32 1.442695, %v916_v41 }
 0x597   : > { %1568 = vpow2.f32 %v918_v42 }
 0x59a   : > { %v914_v43 = vpop.permute.xlu1 %913 }
 0x59b   : > { %v917_v44 = vsub.f32 %v888_v22, %v914_v43 }
 0x59d   : > { %v920_v45 = vmul.f32 1.442695, %v917_v44 }
 0x59f   : > { %1570 = vpow2.f32 %v920_v45 }
 0x5a0   : > { %1572 = vpow2.f32 %v902_v49 }
 0x5a1   : > { %v1569_v46 = vpop.eup %1568  ;;  %1574 = vpow2.f32 %v904_v51 }
 0x5a2   : > { %v926_v47 = vsel %vm744_vm8, %v1569_v46, 0.0  ;;  %v951_v48 = vpack.c.bf16 %v1569_v46, %v1569_v46 }
 0x5a3   : > { %927 = vadd.xlane.f32.xlu1 %v926_v47 }
 0x5a4   : > { %1405 = vmatmul.mubr.msk.bf16.vlgmr.msra.gmra.mrb[4].mxu0 %vm753_vm7, %v951_v48 }
 0x5a5   : > { %1416 = vmatprep.mubr.msk.bf16.mxu0 %vm1951_vm2, %v1950_v12  ;;  %1415 = vmatpush3.bf16.msra.mxu0 %v1567_v2 }
 0x5a9   : > { %v1571_v50 = vpop.eup %1570 }
 0x5aa   : > { %v929_v52 = vsel %vm744_vm8, %v1571_v50, 0.0  ;;  %v952_v53 = vpack.c.bf16 %v1571_v50, %v1571_v50  ;;  %v1573_v54 = vpop.eup %1572 }
 0x5ab   : > { %930 = vadd.xlane.f32.xlu0 %v929_v52  ;;  %v1575_v55 = vpop.eup %1574  ;;  %v924_v57 = vmul.f32 %v1573_v54, %v922_v56 }
 0x5ac   : > { %1411 = vmatmul.mubr.msk.bf16.vlgmr.msra.gmra.mrb[8].mxu1 %vm753_vm7, %v952_v53  ;;  %v925_v61 = vmul.f32 %v1575_v55, %v923_v60 }
 0x5b4   : > { %941 = vperm.xlu1 %1564, %v1573_v54  }
 0x5b8   : > { %946 = vperm.xlu1 %1564, %v1575_v55  }
 0x630   : > { %v928_v58 = vpop.xlane.xlu1 %927 }
 0x631   : > { %v932_v59 = vadd.f32 %v928_v58, %v924_v57 }
 0x633   : > { %935 = vst.msk [vmem:[#allocation5] sm:$0x3] %vm739_vm9, %v932_v59 }
 0x634   : > { %v942_v4 = vpop.permute.xlu1 %941 }
 0x635   : > { %v949_v5 = vmul.f32 %v942_v4, %v937_v3 }
 0x638   : > { %v931_v62 = vpop.xlane.xlu0 %930  ;;  %v947_v13 = vpop.permute.xlu1 %946 }
 0x639   : > { %v933_v63 = vadd.f32 %v931_v62, %v925_v61  ;;  %v950_v14 = vmul.f32 %v947_v13, %v938_v11 }
 0x63a   : > { %v1056_v0 = vld [vmem:[#allocation5] sm:$0x3] }
 0x63b   : > { %936 = vst.msk [vmem:[#allocation5 + $0x2] sm:$0x3] %vm739_vm9, %v933_v63  ;;  %1060 = vperm.xlu0 %1563, %v1056_v0  }
 0x642   : > { %v1057_v1 = vld [vmem:[#allocation5 + $0x2] sm:$0x3] }
 0x643   : > { %1065 = vperm.xlu1 %1564, %v1057_v1  }
 0x677   : > { %v993_v6 = vpop.f32.mrb[4].mxu0 }
 0x678   : > { %v1045_v7 = vadd.f32 %v993_v6, %v949_v5  ;;  %v1406_v8 = vpop.f32.mrb[5].mxu0 }
 0x679   : > { %v996_v9 = vpop.f32.mrb[6].mxu0 }
 0x67a   : > { %1047 = vst.msk [vmem:[#allocation6] sm:$0x3] %vm744_vm8, %v1045_v7  ;;  %v1407_v10 = vpop.f32.mrb[7].mxu0 }
 0x67f   : > { %v1039_v15 = vpop.f32.mrb[8].mxu1 }
 0x680   : > { %v1046_v16 = vadd.f32 %v1039_v15, %v950_v14  ;;  %v1412_v17 = vpop.f32.mrb[9].mxu1 }
 0x681   : > { %v1042_v18 = vpop.f32.mrb[10].mxu1  ;;  %v1054_v25 = vld [vmem:[#allocation6] sm:$0x3] }
 0x682   : > { %1048 = vst.msk [vmem:[#allocation6 + $0x2] sm:$0x3] %vm744_vm8, %v1046_v16  ;;  %v1413_v19 = vpop.f32.mrb[11].mxu1 }
 0x689   : > { %v1055_v26 = vld [vmem:[#allocation6 + $0x2] sm:$0x3] }
 0x6ba   : > { %v1061_v20 = vpop.permute.xlu0 %1060 }
 0x6bb   : > { %1576 = vrcp.f32 %v1061_v20 }
 0x6c2   : > { %v1066_v21 = vpop.permute.xlu1 %1065 }
 0x6c3   : > { %1578 = vrcp.f32 %v1066_v21 }
 0x6c5   : > { %v1577_v22 = vpop.eup %1576 }
 0x6c6   : > { %v1070_v27 = vmul.f32 %v1577_v22, %v1054_v25 }
 0x6cd   : > { %v1579_v23 = vpop.eup %1578 }
 0x6ce   : > { %v1072_v28 = vmul.f32 %v1579_v23, %v1055_v26 }
 0x6d0   : > { %v1073_v29 = vcombine.low %v1070_v27, %v1072_v28 }
 0x6d2   : > { %v1080_v30 = vrot.slane %v1073_v29, %v2390_v24 }
 0x6d4   : > { %v1081_v31 = vcombine.high %v1080_v30, %v1950_v12 }
 0x6d6   : > { %1083 = vrot.lane.b32.xlu1 %v1081_v31, %s1959_s24 }
 0x748   : > { %v1084_v32 = vpop.permute.xlu1 %1083 }
 0x749   : > { %v1086_v33 = vsel %vm753_vm7, %v1080_v30, %v1084_v32 }
 0x74a   : > { %v1087_v34 = vpack.c.bf16 %v1086_v33, %v1086_v33 }
 0x74c   : > { %1417 = vmatmul.mubr.msk.bf16.vlgmr.msra.gmra.mrb[8].mxu0 %vm1096_vm14, %v1087_v34 }
 0x81f   : > { %v1134_v36 = vpop.f32.mrb[8].mxu0 }
 0x820   : > { %v1140_v37 = vadd.f32 %v1134_v36, %v1068_v35  ;;  %v1418_v38 = vpop.f32.mrb[9].mxu0 }
 0x821   : > { %v1137_v24 = vpop.f32.mrb[10].mxu0 }
 0x822   : > { %v1419_v12 = vpop.f32.mrb[11].mxu0  ;;  %1142 = vst.msk [vmem:[#allocation20] sm:$0x3] %vm1141_vm15, %v1140_v37 }
 0x823   : > { %1853 = shalt.err (!%p1850_p8)
}
 0x824   : > { %s2576_s30 = sld [smem:[#allocation39_spill]] }
 0x82a   : > { %s2577_s22 = smov %s2576_s30  ;;  %s1854_s18 = scalar_lea.hbm %s2576_s30, 32 }
 0x82b   : > { %p1855_p5 = scmp.ne.s32.totalorder %s2577_s22, %s1854_s18  ;;  %p1860_p2 = scmp.lt.u32.totalorder %s1854_s18, %s2577_s22 }
 0x82d   : > { %p1856_p9 = pnand %p1855_p5, %p1492_p1 }
 0x82f   : > { %p1857_p13 = pneg %p1856_p9 }
 0x831   : > { %p1862_p6 = pnand %p1860_p2, %p1857_p13 }
 0x833   : > { %1865 = shalt.err (!%p1862_p6)
}
 0x834   : > { %1449 = dma.vmem_to_hbm [thread:$0]  (%p1492_p1), %s1151_s26, 32, %s2577_s22, [#allocation9]  }
 0x835   : > { %1911 = dma.done.wait (%p1492_p1), [#allocation9], 32  }
 0x836   : > { %1913 = vsyncadd (%p1492_p1), [#allocation9], 4294967264 }
 0x837 PF: > { %s2578_s20 = sld [smem:[#allocation29_spill]]  ;;  %s2579_s30 = sld [smem:[#allocation27_spill]] }
 0x838   : > { %s2580_s8 = sld [smem:[#allocation34_spill]]  ;;  %s2581_s17 = sld [smem:[#allocation33_spill]] }
 0x839   : > { %s2582_s10 = smov %s1924_s11  ;;  %s2584_s12 = smov %s1932_s13 }
 0x83d   : > { %s23_s14 = sadd.s32 1, %s2578_s20  }
 0x83e   : > { %p20_p10 = scmp.ge.s32.totalorder %s23_s14, 4   ;;  %s2583_s11 = smov %s2580_s8 }
 0x83f   : > { %s2585_s13 = smov %s2581_s17 }
 0x840   :  { %22 = sbr.rel (!%p20_p10) target bundleno = 12 (0xc), region = 158 }
 0x847   :  { %1163 = vsyncpa [#allocation8], 1 }
 0x848   :  { %1165 = vsyncpa [#allocation8 + $0x1], 1 }
 0x849   :  { %1166 = vsyncpa [#allocation11], 1 }
 0x84a   :  { %1167 = vsyncpa [#allocation14], 1 }
 0x84b   :  { %1168 = vsyncpa [#allocation9], 1 }
 0x84c   :  { %1170 = vsyncpa [#allocation9 + $0x1], 1 }

</bundles_post_ra>
